<compile_context>
chip_gen: v7x
topology: tpu7x:2x2x1
jax: 0.10.0
libtpu: 0.0.40
codegen_flags: <defaults>
</compile_context>

<pallas_src>
import numpy as np

import jax
import jax.numpy as jnp
from jax.experimental import pallas as pl
from jax.experimental.pallas import tpu as pltpu


def _elu(v):
    return jnp.where(v > 0, v, jnp.exp(jnp.minimum(v, 0.0)) - 1.0)


def _gat_fused_kernel(x_ref, bias_ref, tile_ref, seg_ref,
                      wr1e_ref, wl1r_ref, wl1bd_ref, att1e_ref, b1_ref,
                      wl2t_ref, wr2e_ref, att2_ref, b2_ref,
                      out_ref,
                      xbd_scr, mseg_scr):
    n, f_in = x_ref.shape
    heads = seg_ref.shape[0]
    c1 = wl1r_ref.shape[0]
    d_out = wl2t_ref.shape[0]

    x = x_ref[...]                                        # (N, F)
    neg = bias_ref[...].astype(jnp.float32)               # (N, N) 0 / -1e30
    seg = seg_ref[...]                                    # (H, H*N) 0/1

    # ---- block-diagonal x: xbd[h*N + j, h*F + f] = x[j, f] -----------------
    # Reused twice: packed source projection and the K=H*N aggregation matmul.
    xbd_scr[...] = jnp.zeros_like(xbd_scr)
    for h in range(heads):
        xbd_scr[h * n:(h + 1) * n, h * f_in:(h + 1) * f_in] = x
    xbd = xbd_scr[...]                                    # (H*N, H*F)

    # Packed source rows: glp[c, h*N + j] = (x @ Wl1)[j, h*C + c]
    glp = jnp.einsum('ck,jk->cj', wl1r_ref[...], xbd,
                     preferred_element_type=jnp.float32)  # (C, H*N)

    # Packed additive mask: same (N, N) mask replicated per head segment,
    # produced with one MXU op (no lane concatenation, no H*N^2 HBM input).
    mask_p = jnp.dot(neg, tile_ref[...],
                     preferred_element_type=jnp.float32)  # (N, H*N)

    # ---- layer 1 scores: C iterations on full-width (N, H*N) tiles ---------
    scores = mask_p
    for c in range(c1):
        # Target-side broadcast via the (idle) MXU: grc[i, h*N+j] = gr1[i,h*C+c]
        grc = jnp.dot(x, wr1e_ref[c],
                      preferred_element_type=jnp.float32)   # (N, H*N)
        t = grc + glp[c:c + 1, :]                            # + source row
        t = jnp.maximum(t, 0.2 * t)                          # LeakyReLU(0.2)
        scores = scores + att1e_ref[c:c + 1, :] * t

    # ---- segmented softmax over the source axis (per 16-lane head segment) -
    for h in range(heads):
        mseg_scr[:, h:h + 1] = jnp.max(scores[:, h * n:(h + 1) * n],
                                       axis=-1, keepdims=True)
    m_b = jnp.dot(mseg_scr[...], seg,
                  preferred_element_type=jnp.float32)        # (N, H*N)
    p = jnp.exp(scores - m_b)
    den_seg = jnp.einsum('il,hl->ih', p, seg,
                         preferred_element_type=jnp.float32)  # (N, H)
    den_b = jnp.dot(den_seg, seg,
                    preferred_element_type=jnp.float32)       # (N, H*N)
    alpha_p = p * pl.reciprocal(den_b, approx=True)           # (N, H*N)

    # ---- layer 1 aggregation: one K = H*N matmul + block-diag weight -------
    agg_x = jnp.dot(alpha_p, xbd,
                    preferred_element_type=jnp.float32)       # (N, H*F)
    h1 = _elu(jnp.dot(agg_x, wl1bd_ref[...],
                      preferred_element_type=jnp.float32)
              + b1_ref[...])                                  # (N, H*C)

    # ---- layer 2: heads=1, concat=False (mean over 1 head == identity) -----
    glt2 = jnp.einsum('dk,ik->di', wl2t_ref[...], h1,
                      preferred_element_type=jnp.float32)     # (D, N)
    s2 = neg
    for d in range(d_out):
        grd = jnp.dot(h1, wr2e_ref[d],
                      preferred_element_type=jnp.float32)     # (N, N)
        t = grd + glt2[d:d + 1, :]
        t = jnp.maximum(t, 0.2 * t)
        s2 = s2 + att2_ref[0, d] * t
    m2 = jnp.max(s2, axis=-1, keepdims=True)
    p2 = jnp.exp(s2 - m2)
    alpha2 = p2 * pl.reciprocal(jnp.sum(p2, axis=-1, keepdims=True),
                                approx=True)
    h2 = jnp.einsum('ij,dj->id', alpha2, glt2,
                    preferred_element_type=jnp.float32) + b2_ref[...]  # (N, D)

    # ---- log_softmax + packed (h | logp) writeback --------------------------
    mo = jnp.max(h2, axis=-1, keepdims=True)
    lse = mo + jnp.log(jnp.sum(jnp.exp(h2 - mo), axis=-1, keepdims=True))
    out_ref[:, :d_out] = h2
    out_ref[:, d_out:] = h2 - lse


def gat_forward(x, attn_bias, kp):
    """Full GAT forward (eval mode). kp = pack_params(make_params(...), N)."""
    n, f_in = x.shape
    heads = kp["seg_expand"].shape[0]
    d_out = kp["wl2t"].shape[0]

    vmem = pl.BlockSpec(memory_space=pltpu.MemorySpace.VMEM)
    smem = pl.BlockSpec(memory_space=pltpu.MemorySpace.SMEM)

    out = pl.pallas_call(
        _gat_fused_kernel,
        out_shape=jax.ShapeDtypeStruct((n, 2 * d_out), jnp.float32),
        in_specs=[vmem, vmem, vmem, vmem,          # x, mask bias, tile, seg
                  vmem, vmem, vmem, vmem, vmem,    # wr1e, wl1r, wl1bd, att1e, b1
                  vmem, vmem, smem, vmem],         # wl2t, wr2e, att2, b2
        out_specs=vmem,
        scratch_shapes=[pltpu.VMEM((heads * n, heads * f_in), jnp.float32),
                        pltpu.VMEM((n, heads), jnp.float32)],
    )(x, attn_bias,
      kp["tile_mat"], kp["seg_expand"],
      kp["wr1e"], kp["wl1r"], kp["wl1bd"], kp["att1e"], kp["b1"],
      kp["wl2t"], kp["wr2e"], kp["att2"], kp["b2"])
    return out[:, :d_out], out[:, d_out:]


def make_params(key, dim_in, dim_h, dim_out, heads):
    ks = jax.random.split(key, 6)
    glorot = lambda k, shape, fan: (jax.random.normal(k, shape, jnp.float32)
                                    * (1.0 / jnp.sqrt(fan)))
    return {
        # Head-fused weights: columns [h*dim_h:(h+1)*dim_h] belong to head h.
        "wl1": glorot(ks[0], (dim_in, heads * dim_h), dim_in),
        "wr1": glorot(ks[1], (dim_in, heads * dim_h), dim_in),
        "att1": glorot(ks[2], (heads, dim_h), dim_h),
        "b1": jnp.zeros((1, heads * dim_h), jnp.float32),
        "wl2": glorot(ks[3], (heads * dim_h, dim_out), heads * dim_h),
        "wr2": glorot(ks[4], (heads * dim_h, dim_out), heads * dim_h),
        "att2": glorot(ks[5], (1, dim_out), dim_out),
        "b2": jnp.zeros((1, dim_out), jnp.float32),
    }


def pack_params(params, num_nodes):
    """One-time host-side repack of the canonical GATv2 weights into the
    head/channel-packed layouts the kernel consumes (no per-call transposes)."""
    n = num_nodes
    wl1 = np.asarray(params["wl1"])
    wr1 = np.asarray(params["wr1"])
    att1 = np.asarray(params["att1"])
    wl2 = np.asarray(params["wl2"])
    wr2 = np.asarray(params["wr2"])
    f_in, hc = wl1.shape
    heads, c1 = att1.shape
    d_out = wl2.shape[1]

    wr1e = np.zeros((c1, f_in, heads * n), np.float32)   # x @ wr1e[c] -> GR_c
    wl1r = np.zeros((c1, heads * f_in), np.float32)      # packed source rows
    wl1bd = np.zeros((heads * f_in, hc), np.float32)     # block-diag Wl1
    att1e = np.zeros((c1, heads * n), np.float32)        # att per lane segment
    for h in range(heads):
        for c in range(c1):
            wr1e[c, :, h * n:(h + 1) * n] = wr1[:, h * c1 + c][:, None]
            wl1r[c, h * f_in:(h + 1) * f_in] = wl1[:, h * c1 + c]
            att1e[c, h * n:(h + 1) * n] = att1[h, c]
        wl1bd[h * f_in:(h + 1) * f_in, h * c1:(h + 1) * c1] = \
            wl1[:, h * c1:(h + 1) * c1]

    seg_expand = np.zeros((heads, heads * n), np.float32)  # segment 0/1 rows
    tile_mat = np.zeros((n, heads * n), np.float32)        # I_N tiled on lanes
    for h in range(heads):
        seg_expand[h, h * n:(h + 1) * n] = 1.0
        tile_mat[:, h * n:(h + 1) * n] = np.eye(n, dtype=np.float32)

    wr2e = np.broadcast_to(wr2.T[:, :, None],
                           (d_out, hc, n)).astype(np.float32)

    return {
        "wr1e": jnp.asarray(wr1e), "wl1r": jnp.asarray(wl1r),
        "wl1bd": jnp.asarray(wl1bd), "att1e": jnp.asarray(att1e),
        "b1": params["b1"],
        "wl2t": jnp.asarray(np.ascontiguousarray(wl2.T)),
        "wr2e": jnp.asarray(wr2e),
        "att2": params["att2"], "b2": params["b2"],
        "seg_expand": jnp.asarray(seg_expand),
        "tile_mat": jnp.asarray(tile_mat),
    }


def build_attention_bias(edge_index, num_nodes, dtype=jnp.bfloat16):
    """Additive softmax bias: 0 where edge j->i exists (plus self loops),
    -1e30 elsewhere.  bf16 keeps HBM traffic low; exp of masked entries
    underflows to exactly 0 and self loops guarantee a finite row max."""
    src, dst = edge_index[0], edge_index[1]
    mask = jnp.zeros((num_nodes, num_nodes), jnp.float32)
    mask = mask.at[dst, src].set(1.0)
    diag = jnp.arange(num_nodes)
    mask = mask.at[diag, diag].set(1.0)     # add_self_loops=True (PyG default)
    return ((mask - 1.0) * 1e30).astype(dtype)


if __name__ == "__main__":
    N, DIM_IN, DIM_H, DIM_OUT, HEADS = 16, 16, 8, 4, 8

    key = jax.random.PRNGKey(0)
    k_x, k_e, k_p = jax.random.split(key, 3)

    x = jax.random.normal(k_x, (N, DIM_IN), jnp.float32)
    # Random directed graph with 48 edges (source row 0, target row 1).
    edge_index = jax.random.randint(k_e, (2, 48), 0, N, dtype=jnp.int32)
    attn_bias = build_attention_bias(edge_index, N)

    params = make_params(k_p, DIM_IN, DIM_H, DIM_OUT, HEADS)
    kparams = pack_params(params, N)

    h, logp = jax.jit(gat_forward)(x, attn_bias, kparams)
    jax.block_until_ready((h, logp))

    assert h.shape == (N, DIM_OUT) and logp.shape == (N, DIM_OUT)
    assert bool(jnp.all(jnp.isfinite(h))) and bool(jnp.all(jnp.isfinite(logp)))
    print("KERNEL_OK")
</pallas_src>

<mosaic_0001>
module attributes {stable_mosaic.version = 11 : i64} {
  func.func @_gat_fused_kernel(%arg0: memref<16x16xf32, #tpu.memory_space<vmem>>, %arg1: memref<16x16xbf16, #tpu.memory_space<vmem>>, %arg2: memref<16x128xf32, #tpu.memory_space<vmem>>, %arg3: memref<8x128xf32, #tpu.memory_space<vmem>>, %arg4: memref<8x16x128xf32, #tpu.memory_space<vmem>>, %arg5: memref<8x128xf32, #tpu.memory_space<vmem>>, %arg6: memref<128x64xf32, #tpu.memory_space<vmem>>, %arg7: memref<8x128xf32, #tpu.memory_space<vmem>>, %arg8: memref<1x64xf32, #tpu.memory_space<vmem>>, %arg9: memref<4x64xf32, #tpu.memory_space<vmem>>, %arg10: memref<4x64x16xf32, #tpu.memory_space<vmem>>, %arg11: memref<1x4xf32, #tpu.memory_space<smem>>, %arg12: memref<1x4xf32, #tpu.memory_space<vmem>>, %arg13: memref<16x8xf32, #tpu.memory_space<vmem>>, %arg14: memref<128x128xf32, #tpu.memory_space<vmem>>, %arg15: memref<16x8xf32, #tpu.memory_space<vmem>>) attributes {dimension_semantics = [], scalar_prefetch = 0 : i64, scratch_operands = 2 : i64, tpu.core_type = #tpu.core_type<tc>} {
    %c0 = arith.constant 0 : index
    %c0_0 = arith.constant 0 : index
    %0 = vector.load %arg0[%c0, %c0_0] : memref<16x16xf32, #tpu.memory_space<vmem>>, vector<16x16xf32>
    %c0_1 = arith.constant 0 : index
    %c0_2 = arith.constant 0 : index
    %1 = vector.load %arg1[%c0_1, %c0_2] : memref<16x16xbf16, #tpu.memory_space<vmem>>, vector<16x16xbf16>
    %2 = arith.extf %1 : vector<16x16xbf16> to vector<16x16xf32>
    %c0_3 = arith.constant 0 : index
    %c0_4 = arith.constant 0 : index
    %3 = vector.load %arg3[%c0_3, %c0_4] : memref<8x128xf32, #tpu.memory_space<vmem>>, vector<8x128xf32>
    %cst = arith.constant 0.000000e+00 : f32
    %4 = vector.broadcast %cst : f32 to vector<128x128xf32>
    %c0_5 = arith.constant 0 : index
    %c0_6 = arith.constant 0 : index
    %5 = vector.load %arg14[%c0_5, %c0_6] : memref<128x128xf32, #tpu.memory_space<vmem>>, vector<128x128xf32>
    tpu.vector_store %arg14[%c0_5, %c0_6], %4 {strides = array<i32>} : memref<128x128xf32, #tpu.memory_space<vmem>>, vector<128x128xf32>,
    %c0_7 = arith.constant 0 : index
    %c0_8 = arith.constant 0 : index
    %6 = vector.load %arg14[%c0_7, %c0_8] : memref<128x128xf32, #tpu.memory_space<vmem>>, vector<16x16xf32>
    tpu.vector_store %arg14[%c0_7, %c0_8], %0 {strides = array<i32>} : memref<128x128xf32, #tpu.memory_space<vmem>>, vector<16x16xf32>,
    %c16 = arith.constant 16 : index
    %c16_9 = arith.constant 16 : index
    %7 = vector.load %arg14[%c16, %c16_9] : memref<128x128xf32, #tpu.memory_space<vmem>>, vector<16x16xf32>
    tpu.vector_store %arg14[%c16, %c16_9], %0 {strides = array<i32>} : memref<128x128xf32, #tpu.memory_space<vmem>>, vector<16x16xf32>,
    %c32 = arith.constant 32 : index
    %c32_10 = arith.constant 32 : index
    %8 = vector.load %arg14[%c32, %c32_10] : memref<128x128xf32, #tpu.memory_space<vmem>>, vector<16x16xf32>
    tpu.vector_store %arg14[%c32, %c32_10], %0 {strides = array<i32>} : memref<128x128xf32, #tpu.memory_space<vmem>>, vector<16x16xf32>,
    %c48 = arith.constant 48 : index
    %c48_11 = arith.constant 48 : index
    %9 = vector.load %arg14[%c48, %c48_11] : memref<128x128xf32, #tpu.memory_space<vmem>>, vector<16x16xf32>
    tpu.vector_store %arg14[%c48, %c48_11], %0 {strides = array<i32>} : memref<128x128xf32, #tpu.memory_space<vmem>>, vector<16x16xf32>,
    %c64 = arith.constant 64 : index
    %c64_12 = arith.constant 64 : index
    %10 = vector.load %arg14[%c64, %c64_12] : memref<128x128xf32, #tpu.memory_space<vmem>>, vector<16x16xf32>
    tpu.vector_store %arg14[%c64, %c64_12], %0 {strides = array<i32>} : memref<128x128xf32, #tpu.memory_space<vmem>>, vector<16x16xf32>,
    %c80 = arith.constant 80 : index
    %c80_13 = arith.constant 80 : index
    %11 = vector.load %arg14[%c80, %c80_13] : memref<128x128xf32, #tpu.memory_space<vmem>>, vector<16x16xf32>
    tpu.vector_store %arg14[%c80, %c80_13], %0 {strides = array<i32>} : memref<128x128xf32, #tpu.memory_space<vmem>>, vector<16x16xf32>,
    %c96 = arith.constant 96 : index
    %c96_14 = arith.constant 96 : index
    %12 = vector.load %arg14[%c96, %c96_14] : memref<128x128xf32, #tpu.memory_space<vmem>>, vector<16x16xf32>
    tpu.vector_store %arg14[%c96, %c96_14], %0 {strides = array<i32>} : memref<128x128xf32, #tpu.memory_space<vmem>>, vector<16x16xf32>,
    %c112 = arith.constant 112 : index
    %c112_15 = arith.constant 112 : index
    %13 = vector.load %arg14[%c112, %c112_15] : memref<128x128xf32, #tpu.memory_space<vmem>>, vector<16x16xf32>
    tpu.vector_store %arg14[%c112, %c112_15], %0 {strides = array<i32>} : memref<128x128xf32, #tpu.memory_space<vmem>>, vector<16x16xf32>,
    %c0_16 = arith.constant 0 : index
    %c0_17 = arith.constant 0 : index
    %14 = vector.load %arg14[%c0_16, %c0_17] : memref<128x128xf32, #tpu.memory_space<vmem>>, vector<128x128xf32>
    %c0_18 = arith.constant 0 : index
    %c0_19 = arith.constant 0 : index
    %15 = vector.load %arg5[%c0_18, %c0_19] : memref<8x128xf32, #tpu.memory_space<vmem>>, vector<8x128xf32>
    "tpu.trace_start"() <{level = 10 : i32, message = "ck,jk->cj"}> : () -> ()
    %cst_20 = arith.constant dense<0.000000e+00> : vector<8x128xf32>
    %16 = tpu.matmul %15, %14, %cst_20 {dimension_numbers = #tpu.dot_dimension_numbers<[1], [1], [0], [0], [0, 0, 1, 0], [], []>} : vector<8x128xf32>, vector<128x128xf32>, vector<8x128xf32> -> vector<8x128xf32>
    "tpu.trace_stop"() : () -> ()
    %c0_21 = arith.constant 0 : index
    %c0_22 = arith.constant 0 : index
    %17 = vector.load %arg2[%c0_21, %c0_22] : memref<16x128xf32, #tpu.memory_space<vmem>>, vector<16x128xf32>
    %cst_23 = arith.constant dense<0.000000e+00> : vector<16x128xf32>
    %18 = tpu.matmul %2, %17, %cst_23 {dimension_numbers = #tpu.dot_dimension_numbers<[1], [0], [0], [1], [0, 0, 1, 1], [], []>} : vector<16x16xf32>, vector<16x128xf32>, vector<16x128xf32> -> vector<16x128xf32>
    %c0_24 = arith.constant 0 : index
    %c0_25 = arith.constant 0 : index
    %c0_26 = arith.constant 0 : index
    %19 = vector.load %arg4[%c0_24, %c0_25, %c0_26] : memref<8x16x128xf32, #tpu.memory_space<vmem>>, vector<1x16x128xf32>
    %20 = vector.shape_cast %19 : vector<1x16x128xf32> to vector<16x128xf32>
    %cst_27 = arith.constant dense<0.000000e+00> : vector<16x128xf32>
    %21 = tpu.matmul %0, %20, %cst_27 {dimension_numbers = #tpu.dot_dimension_numbers<[1], [0], [0], [1], [0, 0, 1, 1], [], []>} : vector<16x16xf32>, vector<16x128xf32>, vector<16x128xf32> -> vector<16x128xf32>
    %22 = vector.extract_strided_slice %16 {offsets = [0, 0], sizes = [1, 128], strides = [1, 1]} : vector<8x128xf32> to vector<1x128xf32>
    %23 = vector.broadcast %22 : vector<1x128xf32> to vector<16x128xf32>
    %24 = arith.addf %21, %23 : vector<16x128xf32>
    %cst_28 = arith.constant 2.000000e-01 : f32
    %25 = vector.broadcast %cst_28 : f32 to vector<16x128xf32>
    %26 = arith.mulf %25, %24 : vector<16x128xf32>
    %27 = arith.maximumf %24, %26 : vector<16x128xf32>
    %c0_29 = arith.constant 0 : index
    %c0_30 = arith.constant 0 : index
    %28 = vector.load %arg7[%c0_29, %c0_30] : memref<8x128xf32, #tpu.memory_space<vmem>>, vector<1x128xf32>
    %29 = vector.broadcast %28 : vector<1x128xf32> to vector<16x128xf32>
    %30 = arith.mulf %29, %27 : vector<16x128xf32>
    %31 = arith.addf %18, %30 : vector<16x128xf32>
    %c1 = arith.constant 1 : index
    %c0_31 = arith.constant 0 : index
    %c0_32 = arith.constant 0 : index
    %32 = vector.load %arg4[%c1, %c0_31, %c0_32] : memref<8x16x128xf32, #tpu.memory_space<vmem>>, vector<1x16x128xf32>
    %33 = vector.shape_cast %32 : vector<1x16x128xf32> to vector<16x128xf32>
    %cst_33 = arith.constant dense<0.000000e+00> : vector<16x128xf32>
    %34 = tpu.matmul %0, %33, %cst_33 {dimension_numbers = #tpu.dot_dimension_numbers<[1], [0], [0], [1], [0, 0, 1, 1], [], []>} : vector<16x16xf32>, vector<16x128xf32>, vector<16x128xf32> -> vector<16x128xf32>
    %35 = vector.extract_strided_slice %16 {offsets = [1, 0], sizes = [1, 128], strides = [1, 1]} : vector<8x128xf32> to vector<1x128xf32>
    %36 = vector.broadcast %35 : vector<1x128xf32> to vector<16x128xf32>
    %37 = arith.addf %34, %36 : vector<16x128xf32>
    %cst_34 = arith.constant 2.000000e-01 : f32
    %38 = vector.broadcast %cst_34 : f32 to vector<16x128xf32>
    %39 = arith.mulf %38, %37 : vector<16x128xf32>
    %40 = arith.maximumf %37, %39 : vector<16x128xf32>
    %c1_35 = arith.constant 1 : index
    %c0_36 = arith.constant 0 : index
    %41 = vector.load %arg7[%c1_35, %c0_36] : memref<8x128xf32, #tpu.memory_space<vmem>>, vector<1x128xf32>
    %42 = vector.broadcast %41 : vector<1x128xf32> to vector<16x128xf32>
    %43 = arith.mulf %42, %40 : vector<16x128xf32>
    %44 = arith.addf %31, %43 : vector<16x128xf32>
    %c2 = arith.constant 2 : index
    %c0_37 = arith.constant 0 : index
    %c0_38 = arith.constant 0 : index
    %45 = vector.load %arg4[%c2, %c0_37, %c0_38] : memref<8x16x128xf32, #tpu.memory_space<vmem>>, vector<1x16x128xf32>
    %46 = vector.shape_cast %45 : vector<1x16x128xf32> to vector<16x128xf32>
    %cst_39 = arith.constant dense<0.000000e+00> : vector<16x128xf32>
    %47 = tpu.matmul %0, %46, %cst_39 {dimension_numbers = #tpu.dot_dimension_numbers<[1], [0], [0], [1], [0, 0, 1, 1], [], []>} : vector<16x16xf32>, vector<16x128xf32>, vector<16x128xf32> -> vector<16x128xf32>
    %48 = vector.extract_strided_slice %16 {offsets = [2, 0], sizes = [1, 128], strides = [1, 1]} : vector<8x128xf32> to vector<1x128xf32>
    %49 = vector.broadcast %48 : vector<1x128xf32> to vector<16x128xf32>
    %50 = arith.addf %47, %49 : vector<16x128xf32>
    %cst_40 = arith.constant 2.000000e-01 : f32
    %51 = vector.broadcast %cst_40 : f32 to vector<16x128xf32>
    %52 = arith.mulf %51, %50 : vector<16x128xf32>
    %53 = arith.maximumf %50, %52 : vector<16x128xf32>
    %c2_41 = arith.constant 2 : index
    %c0_42 = arith.constant 0 : index
    %54 = vector.load %arg7[%c2_41, %c0_42] : memref<8x128xf32, #tpu.memory_space<vmem>>, vector<1x128xf32>
    %55 = vector.broadcast %54 : vector<1x128xf32> to vector<16x128xf32>
    %56 = arith.mulf %55, %53 : vector<16x128xf32>
    %57 = arith.addf %44, %56 : vector<16x128xf32>
    %c3 = arith.constant 3 : index
    %c0_43 = arith.constant 0 : index
    %c0_44 = arith.constant 0 : index
    %58 = vector.load %arg4[%c3, %c0_43, %c0_44] : memref<8x16x128xf32, #tpu.memory_space<vmem>>, vector<1x16x128xf32>
    %59 = vector.shape_cast %58 : vector<1x16x128xf32> to vector<16x128xf32>
    %cst_45 = arith.constant dense<0.000000e+00> : vector<16x128xf32>
    %60 = tpu.matmul %0, %59, %cst_45 {dimension_numbers = #tpu.dot_dimension_numbers<[1], [0], [0], [1], [0, 0, 1, 1], [], []>} : vector<16x16xf32>, vector<16x128xf32>, vector<16x128xf32> -> vector<16x128xf32>
    %61 = vector.extract_strided_slice %16 {offsets = [3, 0], sizes = [1, 128], strides = [1, 1]} : vector<8x128xf32> to vector<1x128xf32>
    %62 = vector.broadcast %61 : vector<1x128xf32> to vector<16x128xf32>
    %63 = arith.addf %60, %62 : vector<16x128xf32>
    %cst_46 = arith.constant 2.000000e-01 : f32
    %64 = vector.broadcast %cst_46 : f32 to vector<16x128xf32>
    %65 = arith.mulf %64, %63 : vector<16x128xf32>
    %66 = arith.maximumf %63, %65 : vector<16x128xf32>
    %c3_47 = arith.constant 3 : index
    %c0_48 = arith.constant 0 : index
    %67 = vector.load %arg7[%c3_47, %c0_48] : memref<8x128xf32, #tpu.memory_space<vmem>>, vector<1x128xf32>
    %68 = vector.broadcast %67 : vector<1x128xf32> to vector<16x128xf32>
    %69 = arith.mulf %68, %66 : vector<16x128xf32>
    %70 = arith.addf %57, %69 : vector<16x128xf32>
    %c4 = arith.constant 4 : index
    %c0_49 = arith.constant 0 : index
    %c0_50 = arith.constant 0 : index
    %71 = vector.load %arg4[%c4, %c0_49, %c0_50] : memref<8x16x128xf32, #tpu.memory_space<vmem>>, vector<1x16x128xf32>
    %72 = vector.shape_cast %71 : vector<1x16x128xf32> to vector<16x128xf32>
    %cst_51 = arith.constant dense<0.000000e+00> : vector<16x128xf32>
    %73 = tpu.matmul %0, %72, %cst_51 {dimension_numbers = #tpu.dot_dimension_numbers<[1], [0], [0], [1], [0, 0, 1, 1], [], []>} : vector<16x16xf32>, vector<16x128xf32>, vector<16x128xf32> -> vector<16x128xf32>
    %74 = vector.extract_strided_slice %16 {offsets = [4, 0], sizes = [1, 128], strides = [1, 1]} : vector<8x128xf32> to vector<1x128xf32>
    %75 = vector.broadcast %74 : vector<1x128xf32> to vector<16x128xf32>
    %76 = arith.addf %73, %75 : vector<16x128xf32>
    %cst_52 = arith.constant 2.000000e-01 : f32
    %77 = vector.broadcast %cst_52 : f32 to vector<16x128xf32>
    %78 = arith.mulf %77, %76 : vector<16x128xf32>
    %79 = arith.maximumf %76, %78 : vector<16x128xf32>
    %c4_53 = arith.constant 4 : index
    %c0_54 = arith.constant 0 : index
    %80 = vector.load %arg7[%c4_53, %c0_54] : memref<8x128xf32, #tpu.memory_space<vmem>>, vector<1x128xf32>
    %81 = vector.broadcast %80 : vector<1x128xf32> to vector<16x128xf32>
    %82 = arith.mulf %81, %79 : vector<16x128xf32>
    %83 = arith.addf %70, %82 : vector<16x128xf32>
    %c5 = arith.constant 5 : index
    %c0_55 = arith.constant 0 : index
    %c0_56 = arith.constant 0 : index
    %84 = vector.load %arg4[%c5, %c0_55, %c0_56] : memref<8x16x128xf32, #tpu.memory_space<vmem>>, vector<1x16x128xf32>
    %85 = vector.shape_cast %84 : vector<1x16x128xf32> to vector<16x128xf32>
    %cst_57 = arith.constant dense<0.000000e+00> : vector<16x128xf32>
    %86 = tpu.matmul %0, %85, %cst_57 {dimension_numbers = #tpu.dot_dimension_numbers<[1], [0], [0], [1], [0, 0, 1, 1], [], []>} : vector<16x16xf32>, vector<16x128xf32>, vector<16x128xf32> -> vector<16x128xf32>
    %87 = vector.extract_strided_slice %16 {offsets = [5, 0], sizes = [1, 128], strides = [1, 1]} : vector<8x128xf32> to vector<1x128xf32>
    %88 = vector.broadcast %87 : vector<1x128xf32> to vector<16x128xf32>
    %89 = arith.addf %86, %88 : vector<16x128xf32>
    %cst_58 = arith.constant 2.000000e-01 : f32
    %90 = vector.broadcast %cst_58 : f32 to vector<16x128xf32>
    %91 = arith.mulf %90, %89 : vector<16x128xf32>
    %92 = arith.maximumf %89, %91 : vector<16x128xf32>
    %c5_59 = arith.constant 5 : index
    %c0_60 = arith.constant 0 : index
    %93 = vector.load %arg7[%c5_59, %c0_60] : memref<8x128xf32, #tpu.memory_space<vmem>>, vector<1x128xf32>
    %94 = vector.broadcast %93 : vector<1x128xf32> to vector<16x128xf32>
    %95 = arith.mulf %94, %92 : vector<16x128xf32>
    %96 = arith.addf %83, %95 : vector<16x128xf32>
    %c6 = arith.constant 6 : index
    %c0_61 = arith.constant 0 : index
    %c0_62 = arith.constant 0 : index
    %97 = vector.load %arg4[%c6, %c0_61, %c0_62] : memref<8x16x128xf32, #tpu.memory_space<vmem>>, vector<1x16x128xf32>
    %98 = vector.shape_cast %97 : vector<1x16x128xf32> to vector<16x128xf32>
    %cst_63 = arith.constant dense<0.000000e+00> : vector<16x128xf32>
    %99 = tpu.matmul %0, %98, %cst_63 {dimension_numbers = #tpu.dot_dimension_numbers<[1], [0], [0], [1], [0, 0, 1, 1], [], []>} : vector<16x16xf32>, vector<16x128xf32>, vector<16x128xf32> -> vector<16x128xf32>
    %100 = vector.extract_strided_slice %16 {offsets = [6, 0], sizes = [1, 128], strides = [1, 1]} : vector<8x128xf32> to vector<1x128xf32>
    %101 = vector.broadcast %100 : vector<1x128xf32> to vector<16x128xf32>
    %102 = arith.addf %99, %101 : vector<16x128xf32>
    %cst_64 = arith.constant 2.000000e-01 : f32
    %103 = vector.broadcast %cst_64 : f32 to vector<16x128xf32>
    %104 = arith.mulf %103, %102 : vector<16x128xf32>
    %105 = arith.maximumf %102, %104 : vector<16x128xf32>
    %c6_65 = arith.constant 6 : index
    %c0_66 = arith.constant 0 : index
    %106 = vector.load %arg7[%c6_65, %c0_66] : memref<8x128xf32, #tpu.memory_space<vmem>>, vector<1x128xf32>
    %107 = vector.broadcast %106 : vector<1x128xf32> to vector<16x128xf32>
    %108 = arith.mulf %107, %105 : vector<16x128xf32>
    %109 = arith.addf %96, %108 : vector<16x128xf32>
    %c7 = arith.constant 7 : index
    %c0_67 = arith.constant 0 : index
    %c0_68 = arith.constant 0 : index
    %110 = vector.load %arg4[%c7, %c0_67, %c0_68] : memref<8x16x128xf32, #tpu.memory_space<vmem>>, vector<1x16x128xf32>
    %111 = vector.shape_cast %110 : vector<1x16x128xf32> to vector<16x128xf32>
    %cst_69 = arith.constant dense<0.000000e+00> : vector<16x128xf32>
    %112 = tpu.matmul %0, %111, %cst_69 {dimension_numbers = #tpu.dot_dimension_numbers<[1], [0], [0], [1], [0, 0, 1, 1], [], []>} : vector<16x16xf32>, vector<16x128xf32>, vector<16x128xf32> -> vector<16x128xf32>
    %113 = vector.extract_strided_slice %16 {offsets = [7, 0], sizes = [1, 128], strides = [1, 1]} : vector<8x128xf32> to vector<1x128xf32>
    %114 = vector.broadcast %113 : vector<1x128xf32> to vector<16x128xf32>
    %115 = arith.addf %112, %114 : vector<16x128xf32>
    %cst_70 = arith.constant 2.000000e-01 : f32
    %116 = vector.broadcast %cst_70 : f32 to vector<16x128xf32>
    %117 = arith.mulf %116, %115 : vector<16x128xf32>
    %118 = arith.maximumf %115, %117 : vector<16x128xf32>
    %c7_71 = arith.constant 7 : index
    %c0_72 = arith.constant 0 : index
    %119 = vector.load %arg7[%c7_71, %c0_72] : memref<8x128xf32, #tpu.memory_space<vmem>>, vector<1x128xf32>
    %120 = vector.broadcast %119 : vector<1x128xf32> to vector<16x128xf32>
    %121 = arith.mulf %120, %118 : vector<16x128xf32>
    %122 = arith.addf %109, %121 : vector<16x128xf32>
    %123 = vector.extract_strided_slice %122 {offsets = [0, 0], sizes = [16, 16], strides = [1, 1]} : vector<16x128xf32> to vector<16x16xf32>
    %cst_73 = arith.constant dense<0xFF800000> : vector<16xf32>
    %124 = vector.multi_reduction <maximumf>, %123, %cst_73 [1] : vector<16x16xf32> to vector<16xf32>
    %125 = vector.shape_cast %124 : vector<16xf32> to vector<16x1xf32>
    %c0_74 = arith.constant 0 : index
    %c0_75 = arith.constant 0 : index
    %126 = vector.load %arg15[%c0_74, %c0_75] : memref<16x8xf32, #tpu.memory_space<vmem>>, vector<16x1xf32>
    tpu.vector_store %arg15[%c0_74, %c0_75], %125 {strides = array<i32>} : memref<16x8xf32, #tpu.memory_space<vmem>>, vector<16x1xf32>,
    %127 = vector.extract_strided_slice %122 {offsets = [0, 16], sizes = [16, 16], strides = [1, 1]} : vector<16x128xf32> to vector<16x16xf32>
    %cst_76 = arith.constant dense<0xFF800000> : vector<16xf32>
    %128 = vector.multi_reduction <maximumf>, %127, %cst_76 [1] : vector<16x16xf32> to vector<16xf32>
    %129 = vector.shape_cast %128 : vector<16xf32> to vector<16x1xf32>
    %c0_77 = arith.constant 0 : index
    %c1_78 = arith.constant 1 : index
    %130 = vector.load %arg15[%c0_77, %c1_78] : memref<16x8xf32, #tpu.memory_space<vmem>>, vector<16x1xf32>
    tpu.vector_store %arg15[%c0_77, %c1_78], %129 {strides = array<i32>} : memref<16x8xf32, #tpu.memory_space<vmem>>, vector<16x1xf32>,
    %131 = vector.extract_strided_slice %122 {offsets = [0, 32], sizes = [16, 16], strides = [1, 1]} : vector<16x128xf32> to vector<16x16xf32>
    %cst_79 = arith.constant dense<0xFF800000> : vector<16xf32>
    %132 = vector.multi_reduction <maximumf>, %131, %cst_79 [1] : vector<16x16xf32> to vector<16xf32>
    %133 = vector.shape_cast %132 : vector<16xf32> to vector<16x1xf32>
    %c0_80 = arith.constant 0 : index
    %c2_81 = arith.constant 2 : index
    %134 = vector.load %arg15[%c0_80, %c2_81] : memref<16x8xf32, #tpu.memory_space<vmem>>, vector<16x1xf32>
    tpu.vector_store %arg15[%c0_80, %c2_81], %133 {strides = array<i32>} : memref<16x8xf32, #tpu.memory_space<vmem>>, vector<16x1xf32>,
    %135 = vector.extract_strided_slice %122 {offsets = [0, 48], sizes = [16, 16], strides = [1, 1]} : vector<16x128xf32> to vector<16x16xf32>
    %cst_82 = arith.constant dense<0xFF800000> : vector<16xf32>
    %136 = vector.multi_reduction <maximumf>, %135, %cst_82 [1] : vector<16x16xf32> to vector<16xf32>
    %137 = vector.shape_cast %136 : vector<16xf32> to vector<16x1xf32>
    %c0_83 = arith.constant 0 : index
    %c3_84 = arith.constant 3 : index
    %138 = vector.load %arg15[%c0_83, %c3_84] : memref<16x8xf32, #tpu.memory_space<vmem>>, vector<16x1xf32>
    tpu.vector_store %arg15[%c0_83, %c3_84], %137 {strides = array<i32>} : memref<16x8xf32, #tpu.memory_space<vmem>>, vector<16x1xf32>,
    %139 = vector.extract_strided_slice %122 {offsets = [0, 64], sizes = [16, 16], strides = [1, 1]} : vector<16x128xf32> to vector<16x16xf32>
    %cst_85 = arith.constant dense<0xFF800000> : vector<16xf32>
    %140 = vector.multi_reduction <maximumf>, %139, %cst_85 [1] : vector<16x16xf32> to vector<16xf32>
    %141 = vector.shape_cast %140 : vector<16xf32> to vector<16x1xf32>
    %c0_86 = arith.constant 0 : index
    %c4_87 = arith.constant 4 : index
    %142 = vector.load %arg15[%c0_86, %c4_87] : memref<16x8xf32, #tpu.memory_space<vmem>>, vector<16x1xf32>
    tpu.vector_store %arg15[%c0_86, %c4_87], %141 {strides = array<i32>} : memref<16x8xf32, #tpu.memory_space<vmem>>, vector<16x1xf32>,
    %143 = vector.extract_strided_slice %122 {offsets = [0, 80], sizes = [16, 16], strides = [1, 1]} : vector<16x128xf32> to vector<16x16xf32>
    %cst_88 = arith.constant dense<0xFF800000> : vector<16xf32>
    %144 = vector.multi_reduction <maximumf>, %143, %cst_88 [1] : vector<16x16xf32> to vector<16xf32>
    %145 = vector.shape_cast %144 : vector<16xf32> to vector<16x1xf32>
    %c0_89 = arith.constant 0 : index
    %c5_90 = arith.constant 5 : index
    %146 = vector.load %arg15[%c0_89, %c5_90] : memref<16x8xf32, #tpu.memory_space<vmem>>, vector<16x1xf32>
    tpu.vector_store %arg15[%c0_89, %c5_90], %145 {strides = array<i32>} : memref<16x8xf32, #tpu.memory_space<vmem>>, vector<16x1xf32>,
    %147 = vector.extract_strided_slice %122 {offsets = [0, 96], sizes = [16, 16], strides = [1, 1]} : vector<16x128xf32> to vector<16x16xf32>
    %cst_91 = arith.constant dense<0xFF800000> : vector<16xf32>
    %148 = vector.multi_reduction <maximumf>, %147, %cst_91 [1] : vector<16x16xf32> to vector<16xf32>
    %149 = vector.shape_cast %148 : vector<16xf32> to vector<16x1xf32>
    %c0_92 = arith.constant 0 : index
    %c6_93 = arith.constant 6 : index
    %150 = vector.load %arg15[%c0_92, %c6_93] : memref<16x8xf32, #tpu.memory_space<vmem>>, vector<16x1xf32>
    tpu.vector_store %arg15[%c0_92, %c6_93], %149 {strides = array<i32>} : memref<16x8xf32, #tpu.memory_space<vmem>>, vector<16x1xf32>,
    %151 = vector.extract_strided_slice %122 {offsets = [0, 112], sizes = [16, 16], strides = [1, 1]} : vector<16x128xf32> to vector<16x16xf32>
    %cst_94 = arith.constant dense<0xFF800000> : vector<16xf32>
    %152 = vector.multi_reduction <maximumf>, %151, %cst_94 [1] : vector<16x16xf32> to vector<16xf32>
    %153 = vector.shape_cast %152 : vector<16xf32> to vector<16x1xf32>
    %c0_95 = arith.constant 0 : index
    %c7_96 = arith.constant 7 : index
    %154 = vector.load %arg15[%c0_95, %c7_96] : memref<16x8xf32, #tpu.memory_space<vmem>>, vector<16x1xf32>
    tpu.vector_store %arg15[%c0_95, %c7_96], %153 {strides = array<i32>} : memref<16x8xf32, #tpu.memory_space<vmem>>, vector<16x1xf32>,
    %c0_97 = arith.constant 0 : index
    %c0_98 = arith.constant 0 : index
    %155 = vector.load %arg15[%c0_97, %c0_98] : memref<16x8xf32, #tpu.memory_space<vmem>>, vector<16x8xf32>
    %cst_99 = arith.constant dense<0.000000e+00> : vector<16x128xf32>
    %156 = tpu.matmul %155, %3, %cst_99 {dimension_numbers = #tpu.dot_dimension_numbers<[1], [0], [0], [1], [0, 0, 1, 1], [], []>} : vector<16x8xf32>, vector<8x128xf32>, vector<16x128xf32> -> vector<16x128xf32>
    %157 = arith.subf %122, %156 : vector<16x128xf32>
    %158 = math.exp %157 : vector<16x128xf32>
    "tpu.trace_start"() <{level = 10 : i32, message = "il,hl->ih"}> : () -> ()
    %cst_100 = arith.constant dense<0.000000e+00> : vector<16x8xf32>
    %159 = tpu.matmul %158, %3, %cst_100 {dimension_numbers = #tpu.dot_dimension_numbers<[1], [1], [0], [0], [0, 0, 1, 0], [], []>} : vector<16x128xf32>, vector<8x128xf32>, vector<16x8xf32> -> vector<16x8xf32>
    "tpu.trace_stop"() : () -> ()
    %cst_101 = arith.constant dense<0.000000e+00> : vector<16x128xf32>
    %160 = tpu.matmul %159, %3, %cst_101 {dimension_numbers = #tpu.dot_dimension_numbers<[1], [0], [0], [1], [0, 0, 1, 1], [], []>} : vector<16x8xf32>, vector<8x128xf32>, vector<16x128xf32> -> vector<16x128xf32>
    %161 = tpu.reciprocal %160 {approx = true} : vector<16x128xf32> -> vector<16x128xf32>
    %162 = arith.mulf %158, %161 : vector<16x128xf32>
    %cst_102 = arith.constant dense<0.000000e+00> : vector<16x128xf32>
    %163 = tpu.matmul %162, %14, %cst_102 {dimension_numbers = #tpu.dot_dimension_numbers<[1], [0], [0], [1], [0, 0, 1, 1], [], []>} : vector<16x128xf32>, vector<128x128xf32>, vector<16x128xf32> -> vector<16x128xf32>
    %c0_103 = arith.constant 0 : index
    %c0_104 = arith.constant 0 : index
    %164 = vector.load %arg6[%c0_103, %c0_104] : memref<128x64xf32, #tpu.memory_space<vmem>>, vector<128x64xf32>
    %cst_105 = arith.constant dense<0.000000e+00> : vector<16x64xf32>
    %165 = tpu.matmul %163, %164, %cst_105 {dimension_numbers = #tpu.dot_dimension_numbers<[1], [0], [0], [1], [0, 0, 1, 1], [], []>} : vector<16x128xf32>, vector<128x64xf32>, vector<16x64xf32> -> vector<16x64xf32>
    %c0_106 = arith.constant 0 : index
    %c0_107 = arith.constant 0 : index
    %166 = vector.load %arg8[%c0_106, %c0_107] : memref<1x64xf32, #tpu.memory_space<vmem>>, vector<1x64xf32>
    %167 = vector.broadcast %166 : vector<1x64xf32> to vector<16x64xf32>
    %168 = arith.addf %165, %167 : vector<16x64xf32>
    %cst_108 = arith.constant 0.000000e+00 : f32
    %169 = vector.broadcast %cst_108 : f32 to vector<16x64xf32>
    %170 = arith.cmpf ogt, %168, %169 : vector<16x64xf32>
    %cst_109 = arith.constant 0.000000e+00 : f32
    %171 = vector.broadcast %cst_109 : f32 to vector<16x64xf32>
    %172 = arith.minimumf %168, %171 : vector<16x64xf32>
    %173 = math.exp %172 : vector<16x64xf32>
    %cst_110 = arith.constant 1.000000e+00 : f32
    %174 = vector.broadcast %cst_110 : f32 to vector<16x64xf32>
    %175 = arith.subf %173, %174 : vector<16x64xf32>
    %176 = arith.select %170, %168, %175 : vector<16x64xi1>, vector<16x64xf32>
    %c0_111 = arith.constant 0 : index
    %c0_112 = arith.constant 0 : index
    %177 = vector.load %arg9[%c0_111, %c0_112] : memref<4x64xf32, #tpu.memory_space<vmem>>, vector<4x64xf32>
    "tpu.trace_start"() <{level = 10 : i32, message = "dk,ik->di"}> : () -> ()
    %cst_113 = arith.constant dense<0.000000e+00> : vector<4x16xf32>
    %178 = tpu.matmul %177, %176, %cst_113 {dimension_numbers = #tpu.dot_dimension_numbers<[1], [1], [0], [0], [0, 0, 1, 0], [], []>} : vector<4x64xf32>, vector<16x64xf32>, vector<4x16xf32> -> vector<4x16xf32>
    "tpu.trace_stop"() : () -> ()
    %c0_114 = arith.constant 0 : index
    %c0_115 = arith.constant 0 : index
    %c0_116 = arith.constant 0 : index
    %179 = vector.load %arg10[%c0_114, %c0_115, %c0_116] : memref<4x64x16xf32, #tpu.memory_space<vmem>>, vector<1x64x16xf32>
    %180 = vector.shape_cast %179 : vector<1x64x16xf32> to vector<64x16xf32>
    %cst_117 = arith.constant dense<0.000000e+00> : vector<16x16xf32>
    %181 = tpu.matmul %176, %180, %cst_117 {dimension_numbers = #tpu.dot_dimension_numbers<[1], [0], [0], [1], [0, 0, 1, 1], [], []>} : vector<16x64xf32>, vector<64x16xf32>, vector<16x16xf32> -> vector<16x16xf32>
    %182 = vector.extract_strided_slice %178 {offsets = [0, 0], sizes = [1, 16], strides = [1, 1]} : vector<4x16xf32> to vector<1x16xf32>
    %183 = vector.broadcast %182 : vector<1x16xf32> to vector<16x16xf32>
    %184 = arith.addf %181, %183 : vector<16x16xf32>
    %cst_118 = arith.constant 2.000000e-01 : f32
    %185 = vector.broadcast %cst_118 : f32 to vector<16x16xf32>
    %186 = arith.mulf %185, %184 : vector<16x16xf32>
    %187 = arith.maximumf %184, %186 : vector<16x16xf32>
    %c0_119 = arith.constant 0 : index
    %c0_120 = arith.constant 0 : index
    %188 = memref.load %arg11[%c0_119, %c0_120] : memref<1x4xf32, #tpu.memory_space<smem>>
    %189 = vector.broadcast %188 : f32 to vector<16x16xf32>
    %190 = arith.mulf %189, %187 : vector<16x16xf32>
    %191 = arith.addf %2, %190 : vector<16x16xf32>
    %c1_121 = arith.constant 1 : index
    %c0_122 = arith.constant 0 : index
    %c0_123 = arith.constant 0 : index
    %192 = vector.load %arg10[%c1_121, %c0_122, %c0_123] : memref<4x64x16xf32, #tpu.memory_space<vmem>>, vector<1x64x16xf32>
    %193 = vector.shape_cast %192 : vector<1x64x16xf32> to vector<64x16xf32>
    %cst_124 = arith.constant dense<0.000000e+00> : vector<16x16xf32>
    %194 = tpu.matmul %176, %193, %cst_124 {dimension_numbers = #tpu.dot_dimension_numbers<[1], [0], [0], [1], [0, 0, 1, 1], [], []>} : vector<16x64xf32>, vector<64x16xf32>, vector<16x16xf32> -> vector<16x16xf32>
    %195 = vector.extract_strided_slice %178 {offsets = [1, 0], sizes = [1, 16], strides = [1, 1]} : vector<4x16xf32> to vector<1x16xf32>
    %196 = vector.broadcast %195 : vector<1x16xf32> to vector<16x16xf32>
    %197 = arith.addf %194, %196 : vector<16x16xf32>
    %cst_125 = arith.constant 2.000000e-01 : f32
    %198 = vector.broadcast %cst_125 : f32 to vector<16x16xf32>
    %199 = arith.mulf %198, %197 : vector<16x16xf32>
    %200 = arith.maximumf %197, %199 : vector<16x16xf32>
    %c0_126 = arith.constant 0 : index
    %c1_127 = arith.constant 1 : index
    %201 = memref.load %arg11[%c0_126, %c1_127] : memref<1x4xf32, #tpu.memory_space<smem>>
    %202 = vector.broadcast %201 : f32 to vector<16x16xf32>
    %203 = arith.mulf %202, %200 : vector<16x16xf32>
    %204 = arith.addf %191, %203 : vector<16x16xf32>
    %c2_128 = arith.constant 2 : index
    %c0_129 = arith.constant 0 : index
    %c0_130 = arith.constant 0 : index
    %205 = vector.load %arg10[%c2_128, %c0_129, %c0_130] : memref<4x64x16xf32, #tpu.memory_space<vmem>>, vector<1x64x16xf32>
    %206 = vector.shape_cast %205 : vector<1x64x16xf32> to vector<64x16xf32>
    %cst_131 = arith.constant dense<0.000000e+00> : vector<16x16xf32>
    %207 = tpu.matmul %176, %206, %cst_131 {dimension_numbers = #tpu.dot_dimension_numbers<[1], [0], [0], [1], [0, 0, 1, 1], [], []>} : vector<16x64xf32>, vector<64x16xf32>, vector<16x16xf32> -> vector<16x16xf32>
    %208 = vector.extract_strided_slice %178 {offsets = [2, 0], sizes = [1, 16], strides = [1, 1]} : vector<4x16xf32> to vector<1x16xf32>
    %209 = vector.broadcast %208 : vector<1x16xf32> to vector<16x16xf32>
    %210 = arith.addf %207, %209 : vector<16x16xf32>
    %cst_132 = arith.constant 2.000000e-01 : f32
    %211 = vector.broadcast %cst_132 : f32 to vector<16x16xf32>
    %212 = arith.mulf %211, %210 : vector<16x16xf32>
    %213 = arith.maximumf %210, %212 : vector<16x16xf32>
    %c0_133 = arith.constant 0 : index
    %c2_134 = arith.constant 2 : index
    %214 = memref.load %arg11[%c0_133, %c2_134] : memref<1x4xf32, #tpu.memory_space<smem>>
    %215 = vector.broadcast %214 : f32 to vector<16x16xf32>
    %216 = arith.mulf %215, %213 : vector<16x16xf32>
    %217 = arith.addf %204, %216 : vector<16x16xf32>
    %c3_135 = arith.constant 3 : index
    %c0_136 = arith.constant 0 : index
    %c0_137 = arith.constant 0 : index
    %218 = vector.load %arg10[%c3_135, %c0_136, %c0_137] : memref<4x64x16xf32, #tpu.memory_space<vmem>>, vector<1x64x16xf32>
    %219 = vector.shape_cast %218 : vector<1x64x16xf32> to vector<64x16xf32>
    %cst_138 = arith.constant dense<0.000000e+00> : vector<16x16xf32>
    %220 = tpu.matmul %176, %219, %cst_138 {dimension_numbers = #tpu.dot_dimension_numbers<[1], [0], [0], [1], [0, 0, 1, 1], [], []>} : vector<16x64xf32>, vector<64x16xf32>, vector<16x16xf32> -> vector<16x16xf32>
    %221 = vector.extract_strided_slice %178 {offsets = [3, 0], sizes = [1, 16], strides = [1, 1]} : vector<4x16xf32> to vector<1x16xf32>
    %222 = vector.broadcast %221 : vector<1x16xf32> to vector<16x16xf32>
    %223 = arith.addf %220, %222 : vector<16x16xf32>
    %cst_139 = arith.constant 2.000000e-01 : f32
    %224 = vector.broadcast %cst_139 : f32 to vector<16x16xf32>
    %225 = arith.mulf %224, %223 : vector<16x16xf32>
    %226 = arith.maximumf %223, %225 : vector<16x16xf32>
    %c0_140 = arith.constant 0 : index
    %c3_141 = arith.constant 3 : index
    %227 = memref.load %arg11[%c0_140, %c3_141] : memref<1x4xf32, #tpu.memory_space<smem>>
    %228 = vector.broadcast %227 : f32 to vector<16x16xf32>
    %229 = arith.mulf %228, %226 : vector<16x16xf32>
    %230 = arith.addf %217, %229 : vector<16x16xf32>
    %cst_142 = arith.constant dense<0xFF800000> : vector<16xf32>
    %231 = vector.multi_reduction <maximumf>, %230, %cst_142 [1] : vector<16x16xf32> to vector<16xf32>
    %232 = vector.shape_cast %231 : vector<16xf32> to vector<16x1xf32>
    %233 = vector.broadcast %232 : vector<16x1xf32> to vector<16x16xf32>
    %234 = arith.subf %230, %233 : vector<16x16xf32>
    %235 = math.exp %234 : vector<16x16xf32>
    %cst_143 = arith.constant dense<0.000000e+00> : vector<16xf32>
    %236 = vector.multi_reduction <add>, %235, %cst_143 [1] : vector<16x16xf32> to vector<16xf32>
    %237 = vector.shape_cast %236 : vector<16xf32> to vector<16x1xf32>
    %238 = tpu.reciprocal %237 {approx = true} : vector<16x1xf32> -> vector<16x1xf32>
    %239 = vector.broadcast %238 : vector<16x1xf32> to vector<16x16xf32>
    %240 = arith.mulf %235, %239 : vector<16x16xf32>
    "tpu.trace_start"() <{level = 10 : i32, message = "ij,dj->id"}> : () -> ()
    %cst_144 = arith.constant dense<0.000000e+00> : vector<16x4xf32>
    %241 = tpu.matmul %240, %178, %cst_144 {dimension_numbers = #tpu.dot_dimension_numbers<[1], [1], [0], [0], [0, 0, 1, 0], [], []>} : vector<16x16xf32>, vector<4x16xf32>, vector<16x4xf32> -> vector<16x4xf32>
    "tpu.trace_stop"() : () -> ()
    %c0_145 = arith.constant 0 : index
    %c0_146 = arith.constant 0 : index
    %242 = vector.load %arg12[%c0_145, %c0_146] : memref<1x4xf32, #tpu.memory_space<vmem>>, vector<1x4xf32>
    %243 = vector.broadcast %242 : vector<1x4xf32> to vector<16x4xf32>
    %244 = arith.addf %241, %243 : vector<16x4xf32>
    %cst_147 = arith.constant dense<0xFF800000> : vector<16xf32>
    %245 = vector.multi_reduction <maximumf>, %244, %cst_147 [1] : vector<16x4xf32> to vector<16xf32>
    %246 = vector.shape_cast %245 : vector<16xf32> to vector<16x1xf32>
    %247 = vector.broadcast %246 : vector<16x1xf32> to vector<16x4xf32>
    %248 = arith.subf %244, %247 : vector<16x4xf32>
    %249 = math.exp %248 : vector<16x4xf32>
    %cst_148 = arith.constant dense<0.000000e+00> : vector<16xf32>
    %250 = vector.multi_reduction <add>, %249, %cst_148 [1] : vector<16x4xf32> to vector<16xf32>
    %251 = vector.shape_cast %250 : vector<16xf32> to vector<16x1xf32>
    %252 = math.log %251 : vector<16x1xf32>
    %253 = arith.addf %246, %252 : vector<16x1xf32>
    %c0_149 = arith.constant 0 : index
    %c0_150 = arith.constant 0 : index
    %254 = vector.load %arg13[%c0_149, %c0_150] : memref<16x8xf32, #tpu.memory_space<vmem>>, vector<16x4xf32>
    tpu.vector_store %arg13[%c0_149, %c0_150], %244 {strides = array<i32>} : memref<16x8xf32, #tpu.memory_space<vmem>>, vector<16x4xf32>,
    %255 = vector.broadcast %253 : vector<16x1xf32> to vector<16x4xf32>
    %256 = arith.subf %244, %255 : vector<16x4xf32>
    %c0_151 = arith.constant 0 : index
    %c4_152 = arith.constant 4 : index
    %257 = vector.load %arg13[%c0_151, %c4_152] : memref<16x8xf32, #tpu.memory_space<vmem>>, vector<16x4xf32>
    tpu.vector_store %arg13[%c0_151, %c4_152], %256 {strides = array<i32>} : memref<16x8xf32, #tpu.memory_space<vmem>>, vector<16x4xf32>,
    return
  }
}

</mosaic_0001>

<bundles_post_ra>
// kernel: gat_forward.1
= control target key start
LH: loop header
LB: loop body
LE: loop exit
PB: predicated region body
PF: predicated region fallthrough
CT: control target
= control target key end

     0   :  { %18 = vsyncpa [#allocation5], 0  ;;  %s3593_s0 = inlined_call_operand.vmem [shape: f32[16,16], index: 0, kind: input, shape index: {}]   ;;  %s3594_s1 = inlined_call_operand.vmem [shape: bf16[16,16], index: 1, kind: input, shape index: {}]   ;;  %s3595_s2 = inlined_call_operand.vmem [shape: f32[16,128], index: 2, kind: input, shape index: {}]   ;;  %s3596_s3 = inlined_call_operand.vmem [shape: f32[8,128], index: 3, kind: input, shape index: {}]   ;;  %s3597_s4 = inlined_call_operand.vmem [shape: f32[8,16,128], index: 4, kind: input, shape index: {}]   ;;  %s3598_s5 = inlined_call_operand.vmem [shape: f32[8,128], index: 5, kind: input, shape index: {}]   ;;  %s3599_s6 = inlined_call_operand.vmem [shape: f32[128,64], index: 6, kind: input, shape index: {}]   ;;  %s3600_s7 = inlined_call_operand.vmem [shape: f32[8,128], index: 7, kind: input, shape index: {}]   ;;  %s3601_s8 = inlined_call_operand.vmem [shape: f32[1,64], index: 8, kind: input, shape index: {}]   ;;  %s3602_s9 = inlined_call_operand.vmem [shape: f32[4,64], index: 9, kind: input, shape index: {}]   ;;  %s3603_s10 = inlined_call_operand.vmem [shape: f32[4,64,16], index: 10, kind: input, shape index: {}]   ;;  %s3604_s11 = inlined_call_operand.vmem [shape: f32[1,4], index: 11, kind: input, shape index: {}]   ;;  %s3605_s12 = inlined_call_operand.vmem [shape: f32[1,4], index: 12, kind: input, shape index: {}]   ;;  %s3606_s13 = inlined_call_operand.vmem [shape: f32[16,8], index: 13, kind: output, shape index: {}]  }
   0x1   :  { %s47_s27 = sshll.u32 %s3604_s11, 4  ;;  %s48_s27 = int_to_ptr.vmem [resolvable:$true] %s47_s27 }
   0x2   :  { %s2956_s28 = scalar_lea.vmem %s48_s27, 16  ;;  %p2961_p1 = scmp.lt.s32.totalorder %s48_s27, %s48_s27 }
   0x3   :  { %p2957_p0 = scmp.ne.s32.totalorder %s48_s27, %s2956_s28  ;;  %p2962_p2 = scmp.lt.s32.totalorder %s2956_s28, %s2956_s28 }
   0x5   :  { %p2963_p3 = por %p2962_p2, %p2961_p1 }
   0x7   :  { %p2964_p4 = pnand %p2963_p3, %p2957_p0 }
   0x9   :  { %2967 = shalt.err (!%p2964_p4)
}
   0xa   :  { %s2970_s29 = smov [#allocation4]  }
   0xb   :  { %50 = dma.vmem_to_smem %s48_s27, 16, %s2970_s29, [#allocation5]  }
   0xc   :  { %2968 = dma.done.wait [#allocation5], 16  }
   0xd   :  { %2969 = vsyncadd [#allocation5], 4294967280 }
   0xe   :  { %56 = sfence }
   0xf   :  { %v3058_v0 = vld [vmem:[%s3593_s0] sm:$0xff]  ;;  %s2971_s15 = smov 16   ;;  %s2972_s11 = smov 32   ;;  %v3065_v1 = vld [vmem:[%s3593_s0 + $0x8] sm:$0xff]  ;;  %v2973_v2 = vmov 0.0   ;;  %vm80_vm0 = vcmask 130048  }
  0x10   :  { %85 = vrot.lane.b32.xlu0 %v3058_v0, %s2971_s15  ;;  %94 = vrot.lane.b32.xlu1 %v3058_v0, %s2972_s11  ;;  %66 = vst [vmem:[#allocation2 + $0x10] sm:$0xff] %v2973_v2  ;;  %64 = vst [vmem:[#allocation2] sm:$0xff] %v2973_v2  ;;  %v2974_v3 = vmov 0.0|0.0   ;;  %s2975_s0 = smov 48   ;;  %s2976_s18 = smov 64   ;;  %v237_v7 = vld [vmem:[%s3597_s4] sm:$0xff] }
  0x11   :  { %65 = vst [vmem:[#allocation2 + $0x8] sm:$0xff] %v2973_v2  ;;  %67 = vst [vmem:[#allocation2 + $0x18] sm:$0xff] %v2973_v2  ;;  %2724 = vmatprep.subr.bf16.mxu0 %v2974_v3  ;;  %2492 = vmatprep.mubr.msk.f32.mxu1 %vm80_vm0, %v3058_v0  ;;  %s2977_s19 = smov 80   ;;  %v238_v8 = vld [vmem:[%s3597_s4 + $0x8] sm:$0xff]  ;;  %s2978_s24 = smov 96   ;;  %v235_v10 = vld [vmem:[%s3595_s2] sm:$0xff] }
  0x12   :  { %68 = vst [vmem:[#allocation2 + $0x20] sm:$0xff] %v2973_v2  ;;  %69 = vst [vmem:[#allocation2 + $0x28] sm:$0xff] %v2973_v2  ;;  %v2748_v9 = vpack.c.bf16 %v238_v8, %v237_v7  ;;  %v236_v11 = vld [vmem:[%s3595_s2 + $0x8] sm:$0xff]  ;;  %s2979_s29 = smov 112   ;;  %v3123_v13 = vld [vmem:[%s3594_s1] sm:$0xff]   ;;  %vm2980_vm1 = vmmov 0  }
  0x13   :  { %70 = vst [vmem:[#allocation2 + $0x30] sm:$0xff] %v2973_v2  ;;  %71 = vst [vmem:[#allocation2 + $0x38] sm:$0xff] %v2973_v2  ;;  %v2752_v12 = vpack.c.bf16 %v236_v11, %v235_v10  ;;  %v2221_v14 = vld [vmem:[%s3597_s4 + $0x10] sm:$0xff]  ;;  %v2222_v15 = vld [vmem:[%s3597_s4 + $0x18] sm:$0xff]  ;;  %v2307_v16 = vunpack.c.l.bf16 %v3123_v13  ;;  %v2308_v17 = vunpack.c.h.bf16 %v3123_v13  ;;  %2485 = vmatprep.mubr.msk.f32.mxu0 %vm2980_vm1, %v2973_v2  ;;  %vm91_vm2 = vcmask 261248   ;;  %s2278_s30 = sld [smem:[#allocation4 + $0x1]] }
  0x14   :  { %72 = vst [vmem:[#allocation2 + $0x40] sm:$0xff] %v2973_v2  ;;  %73 = vst [vmem:[#allocation2 + $0x48] sm:$0xff] %v2973_v2  ;;  %87 = vrot.lane.b32.xlu0 %v3065_v1, %s2971_s15  ;;  %96 = vrot.lane.b32.xlu1 %v3065_v1, %s2972_s11  ;;  %v2756_v18 = vpack.c.bf16 %v2222_v15, %v2221_v14  ;;  %v2226_v19 = vld [vmem:[%s3597_s4 + $0x20] sm:$0xff]  ;;  %v2227_v20 = vld [vmem:[%s3597_s4 + $0x28] sm:$0xff]  ;;  %vm100_vm3 = vcmask 392448   ;;  %vm109_vm4 = vcmask 523648  }
  0x15   :  { %74 = vst [vmem:[#allocation2 + $0x50] sm:$0xff] %v2973_v2  ;;  %75 = vst [vmem:[#allocation2 + $0x58] sm:$0xff] %v2973_v2  ;;  %2749 = vmatprep.subr.bf16.mxu1 %v2748_v9  ;;  %v2760_v21 = vpack.c.bf16 %v2227_v20, %v2226_v19  ;;  %v2231_v22 = vld [vmem:[%s3597_s4 + $0x30] sm:$0xff]  ;;  %v2232_v23 = vld [vmem:[%s3597_s4 + $0x38] sm:$0xff]  ;;  %vm118_vm5 = vcmask 654848   ;;  %vm127_vm6 = vcmask 786048  }
  0x16   :  { %76 = vst [vmem:[#allocation2 + $0x60] sm:$0xff] %v2973_v2  ;;  %77 = vst [vmem:[#allocation2 + $0x68] sm:$0xff] %v2973_v2  ;;  %2751 = vmatpush3.bf16.msra.mxu1 %v2748_v9  ;;  %v2764_v24 = vpack.c.bf16 %v2232_v23, %v2231_v22  ;;  %v2236_v25 = vld [vmem:[%s3597_s4 + $0x40] sm:$0xff]  ;;  %v2237_v26 = vld [vmem:[%s3597_s4 + $0x48] sm:$0xff]  ;;  %vm136_vm7 = vcmask 917248   ;;  %vm145_vm8 = vcmask 1048448  }
  0x17   :  { %78 = vst [vmem:[#allocation2 + $0x70] sm:$0xff] %v2973_v2  ;;  %79 = vst [vmem:[#allocation2 + $0x78] sm:$0xff] %v2973_v2  ;;  %2753 = vmatprep.subr.bf16.mxu1 %v2752_v12  ;;  %v2768_v27 = vpack.c.bf16 %v2237_v26, %v2236_v25  ;;  %v2241_v28 = vld [vmem:[%s3597_s4 + $0x50] sm:$0xff]  ;;  %v2242_v29 = vld [vmem:[%s3597_s4 + $0x58] sm:$0xff]  ;;  %vm1085_vm9 = vcmask 7168   ;;  %vm1094_vm10 = vcmask 15368  }
  0x18   :  { %81 = vst.msk [vmem:[#allocation2] sm:$0xff] %vm80_vm0, %v3058_v0  ;;  %82 = vst.msk [vmem:[#allocation2 + $0x8] sm:$0xff] %vm80_vm0, %v3065_v1  ;;  %105 = vrot.lane.b32.xlu1 %v3065_v1, %s2975_s0  ;;  %103 = vrot.lane.b32.xlu0 %v3058_v0, %s2975_s0  ;;  %v2772_v30 = vpack.c.bf16 %v2242_v29, %v2241_v28  ;;  %v2246_v31 = vld [vmem:[%s3597_s4 + $0x60] sm:$0xff]  ;;  %v2247_v32 = vld [vmem:[%s3597_s4 + $0x68] sm:$0xff]  ;;  %vm1103_vm11 = vcmask 23568   ;;  %vm1112_vm12 = vcmask 31768  }
  0x19   :  { %2493 = vmatmul.mubr.msk.f32.vlgmr.msra.gmra.mrb[0].mxu1 %vm80_vm0, %v3065_v1  ;;  %v2776_v33 = vpack.c.bf16 %v2247_v32, %v2246_v31  ;;  %v2251_v34 = vld [vmem:[%s3597_s4 + $0x70] sm:$0xff]  ;;  %v2252_v35 = vld [vmem:[%s3597_s4 + $0x78] sm:$0xff]  ;;  %v164_v11 = vld [vmem:[%s3598_s5] sm:$0xff]  ;;  %vm1121_vm13 = vcmask 39968   ;;  %vm1130_vm14 = vcmask 48168   ;;  %vm1139_vm15 = vcmask 56368  }
  0x1a   :  { %2755 = vmatpush3.bf16.msra.mxu1 %v2752_v12  ;;  %2499 = vmatprep.mubr.msk.f32.mxu1 %vm80_vm0, %v2307_v16  ;;  %v2780_v36 = vpack.c.bf16 %v2252_v35, %v2251_v34  ;;  %s2289_s14 = sld [smem:[#allocation4 + $0x2]]  ;;  %s2300_s15 = sld [smem:[#allocation4 + $0x3]] }
  0x1b   :  { %2757 = vmatprep.subr.bf16.mxu1 %v2756_v18 }
  0x1c   :  { %114 = vrot.lane.b32.xlu1 %v3065_v1, %s2976_s18  ;;  %112 = vrot.lane.b32.xlu0 %v3058_v0, %s2976_s18 }
  0x1d   :  { %2500 = vmatmul.mubr.msk.f32.vlgmr.msra.gmra.mrb[2].mxu1 %vm80_vm0, %v2308_v17 }
  0x1e   :  { %2759 = vmatpush3.bf16.msra.mxu1 %v2756_v18  ;;  %2506 = vmatprep.mubr.msk.f32.mxu1 %vm80_vm0, %v3058_v0 }
  0x1f   :  { %v148_v4 = vld [vmem:[#allocation2] sm:$0xff]  ;;  %v149_v5 = vld [vmem:[#allocation2 + $0x8] sm:$0xff]  ;;  %2761 = vmatprep.subr.bf16.mxu1 %v2760_v21 }
  0x20   :  { %v3094_v6 = vpack.c.bf16 %v149_v5, %v148_v4  ;;  %123 = vrot.lane.b32.xlu1 %v3065_v1, %s2977_s19  ;;  %121 = vrot.lane.b32.xlu0 %v3058_v0, %s2977_s19 }
  0x21   :  { %2507 = vmatmul.mubr.msk.f32.vlgmr.msra.gmra.mrb[4].mxu1 %vm80_vm0, %v3065_v1 }
  0x22   :  { %2726 = vmatpush3.bf16.xpose.msra.mxu0 %v3094_v6  ;;  %2763 = vmatpush3.bf16.msra.mxu1 %v2760_v21 }
  0x23   :  { %2727 = vmatprep.subr.bf16.mxu0 %v2974_v3  ;;  %2513 = vmatprep.mubr.msk.f32.mxu1 %vm80_vm0, %v3058_v0 }
  0x24   :  { %132 = vrot.lane.b32.xlu1 %v3065_v1, %s2978_s24  ;;  %130 = vrot.lane.b32.xlu0 %v3058_v0, %s2978_s24 }
  0x25   :  { %2765 = vmatprep.subr.bf16.mxu1 %v2764_v24  ;;  %2514 = vmatmul.mubr.msk.f32.vlgmr.msra.gmra.mrb[6].mxu1 %vm80_vm0, %v3065_v1 }
  0x26   :  { %2767 = vmatpush3.bf16.msra.mxu1 %v2764_v24  ;;  %2520 = vmatprep.mubr.msk.f32.mxu1 %vm80_vm0, %v3058_v0 }
  0x27   :  { %2769 = vmatprep.subr.bf16.mxu1 %v2768_v27 }
  0x28   :  { %141 = vrot.lane.b32.xlu1 %v3065_v1, %s2979_s29  ;;  %139 = vrot.lane.b32.xlu0 %v3058_v0, %s2979_s29 }
  0x29   :  { %2521 = vmatmul.mubr.msk.f32.vlgmr.msra.gmra.mrb[8].mxu1 %vm80_vm0, %v3065_v1 }
  0x2a   :  { %2771 = vmatpush3.bf16.msra.mxu1 %v2768_v27  ;;  %2527 = vmatprep.mubr.msk.f32.mxu1 %vm80_vm0, %v3058_v0 }
  0x2b   :  { %2773 = vmatprep.subr.bf16.mxu1 %v2772_v30 }
  0x2d   :  { %2528 = vmatmul.mubr.msk.f32.vlgmr.msra.gmra.mrb[10].mxu1 %vm80_vm0, %v3065_v1 }
  0x2e   :  { %2775 = vmatpush3.bf16.msra.mxu1 %v2772_v30  ;;  %2534 = vmatprep.mubr.msk.f32.mxu1 %vm80_vm0, %v3058_v0 }
  0x2f   :  { %2777 = vmatprep.subr.bf16.mxu1 %v2776_v33 }
  0x31   :  { %2535 = vmatmul.mubr.msk.f32.vlgmr.msra.gmra.mrb[12].mxu1 %vm80_vm0, %v3065_v1 }
  0x32   :  { %2779 = vmatpush3.bf16.msra.mxu1 %v2776_v33  ;;  %2541 = vmatprep.mubr.msk.f32.mxu1 %vm80_vm0, %v3058_v0  ;;  %v239_v33 = vlaneseq }
  0x33   :  { %2781 = vmatprep.subr.bf16.mxu1 %v2780_v36 }
  0x34   :  { %v3263_v34 = vshrl.u32 %v239_v33, 7 }
  0x35   :  { %2542 = vmatmul.mubr.msk.f32.vlgmr.msra.gmra.mrb[14].mxu1 %vm80_vm0, %v3065_v1 }
  0x36   :  { %2783 = vmatpush3.bf16.msra.mxu1 %v2780_v36  ;;  %2548 = vmatprep.mubr.msk.f32.mxu1 %vm80_vm0, %v3058_v0  ;;  %v241_v35 = vsub.s32 0, %v3263_v34  ;;  %v419_v36 = vsub.s32 1, %v3263_v34 }
  0x39   :  { %2549 = vmatmul.mubr.msk.f32.vlgmr.msra.gmra.mrb[16].mxu1 %vm80_vm0, %v3065_v1 }
  0x82   :  { %v86_v37 = vpop.permute.xlu0 %85  ;;  %v95_v38 = vpop.permute.xlu1 %94 }
  0x83   :  { %92 = vst.msk [vmem:[#allocation2 + $0x10] sm:$0xff] %vm91_vm2, %v86_v37  ;;  %v3607_v37 = vsub.s32 2, %v3263_v34 }
  0x84   :  { %101 = vst.msk [vmem:[#allocation2 + $0x20] sm:$0xff] %vm100_vm3, %v95_v38  ;;  %v609_v38 = vsub.s32 3, %v3263_v34 }
  0x86   :  { %v88_v39 = vpop.permute.xlu0 %87  ;;  %v97_v40 = vpop.permute.xlu1 %96 }
  0x87   :  { %93 = vst.msk [vmem:[#allocation2 + $0x18] sm:$0xff] %vm91_vm2, %v88_v39  ;;  %v704_v39 = vsub.s32 4, %v3263_v34 }
  0x88   :  { %102 = vst.msk [vmem:[#allocation2 + $0x28] sm:$0xff] %vm100_vm3, %v97_v40  ;;  %v799_v40 = vsub.s32 5, %v3263_v34 }
  0x8a   :  { %v106_v41 = vpop.permute.xlu1 %105  ;;  %v104_v42 = vpop.permute.xlu0 %103  ;;  %v150_v43 = vld [vmem:[#allocation2 + $0x10] sm:$0xff] }
  0x8b   :  { %111 = vst.msk [vmem:[#allocation2 + $0x38] sm:$0xff] %vm109_vm4, %v106_v41  ;;  %110 = vst.msk [vmem:[#allocation2 + $0x30] sm:$0xff] %vm109_vm4, %v104_v42  ;;  %v152_v50 = vld [vmem:[#allocation2 + $0x20] sm:$0xff]  ;;  %v894_v41 = vsub.s32 6, %v3263_v34 }
  0x8e   :  { %v151_v44 = vld [vmem:[#allocation2 + $0x18] sm:$0xff]  ;;  %v115_v45 = vpop.permute.xlu1 %114  ;;  %v113_v46 = vpop.permute.xlu0 %112 }
  0x8f   :  { %v3211_v47 = vpack.c.bf16 %v151_v44, %v150_v43  ;;  %120 = vst.msk [vmem:[#allocation2 + $0x48] sm:$0xff] %vm118_vm5, %v115_v45  ;;  %119 = vst.msk [vmem:[#allocation2 + $0x40] sm:$0xff] %vm118_vm5, %v113_v46  ;;  %v153_v51 = vld [vmem:[#allocation2 + $0x28] sm:$0xff] }
  0x90   :  { %v3219_v54 = vpack.c.bf16 %v153_v51, %v152_v50 }
  0x91   :  { %2729 = vmatpush3.bf16.xpose.msra.mxu0 %v3211_v47 }
  0x92   :  { %2730 = vmatprep.subr.bf16.mxu0 %v2974_v3  ;;  %v124_v48 = vpop.permute.xlu1 %123  ;;  %v122_v49 = vpop.permute.xlu0 %121  ;;  %v154_v55 = vld [vmem:[#allocation2 + $0x30] sm:$0xff]  ;;  %v155_v56 = vld [vmem:[#allocation2 + $0x38] sm:$0xff] }
  0x93   :  { %129 = vst.msk [vmem:[#allocation2 + $0x58] sm:$0xff] %vm127_vm6, %v124_v48  ;;  %128 = vst.msk [vmem:[#allocation2 + $0x50] sm:$0xff] %vm127_vm6, %v122_v49  ;;  %v3227_v59 = vpack.c.bf16 %v155_v56, %v154_v55 }
  0x96   :  { %v133_v52 = vpop.permute.xlu1 %132  ;;  %v131_v53 = vpop.permute.xlu0 %130  ;;  %v156_v60 = vld [vmem:[#allocation2 + $0x40] sm:$0xff]  ;;  %v157_v61 = vld [vmem:[#allocation2 + $0x48] sm:$0xff] }
  0x97   :  { %138 = vst.msk [vmem:[#allocation2 + $0x68] sm:$0xff] %vm136_vm7, %v133_v52  ;;  %137 = vst.msk [vmem:[#allocation2 + $0x60] sm:$0xff] %vm136_vm7, %v131_v53  ;;  %v3231_v62 = vpack.c.bf16 %v157_v61, %v156_v60  ;;  %v989_v52 = vsub.s32 7, %v3263_v34  ;;  %v2218_v60 = vld [vmem:[%s3600_s7] ss:$0 sm:$0xff] }
  0x99   :  { %2732 = vmatpush3.bf16.xpose.msra.mxu0 %v3219_v54 }
  0x9a   :  { %2733 = vmatprep.subr.bf16.mxu0 %v2974_v3  ;;  %v142_v57 = vpop.permute.xlu1 %141  ;;  %v140_v58 = vpop.permute.xlu0 %139  ;;  %v158_v63 = vld [vmem:[#allocation2 + $0x50] sm:$0xff]  ;;  %v159_v0 = vld [vmem:[#allocation2 + $0x58] sm:$0xff] }
  0x9b   :  { %147 = vst.msk [vmem:[#allocation2 + $0x78] sm:$0xff] %vm145_vm8, %v142_v57  ;;  %146 = vst.msk [vmem:[#allocation2 + $0x70] sm:$0xff] %vm145_vm8, %v140_v58  ;;  %v3235_v1 = vpack.c.bf16 %v159_v0, %v158_v63 }
  0x9e   :  { %v160_v4 = vld [vmem:[#allocation2 + $0x60] sm:$0xff]  ;;  %v161_v5 = vld [vmem:[#allocation2 + $0x68] sm:$0xff] }
  0x9f   :  { %v3239_v7 = vpack.c.bf16 %v161_v5, %v160_v4 }
  0xa1   :  { %2735 = vmatpush3.bf16.xpose.msra.mxu0 %v3227_v59 }
  0xa2   :  { %2736 = vmatprep.subr.bf16.mxu0 %v2974_v3  ;;  %v162_v8 = vld [vmem:[#allocation2 + $0x70] sm:$0xff]  ;;  %v163_v9 = vld [vmem:[#allocation2 + $0x78] sm:$0xff] }
  0xa3   :  { %v3243_v10 = vpack.c.bf16 %v163_v9, %v162_v8 }
  0xa9   :  { %2738 = vmatpush3.bf16.xpose.msra.mxu0 %v3231_v62 }
  0xaa   :  { %2739 = vmatprep.subr.bf16.mxu0 %v2974_v3 }
  0xb1   :  { %2741 = vmatpush3.bf16.xpose.msra.mxu0 %v3235_v1 }
  0xb2   :  { %2742 = vmatprep.subr.bf16.mxu0 %v2974_v3 }
  0xb9   :  { %2744 = vmatpush3.bf16.xpose.msra.mxu0 %v3239_v7 }
  0xba   :  { %2745 = vmatprep.subr.bf16.mxu0 %v2974_v3 }
  0xc1   :  { %2747 = vmatpush3.bf16.xpose.msra.mxu0 %v3243_v10 }
  0xc8   :  { %2486 = vmatmul.mubr.f32.vlgmr.msra.gmra.mrb[0].mxu0 %v164_v11 }
  0xec   :  { %v2494_v12 = vpop.f32.mrb[0].mxu1 }
  0xed   :  { %v313_v14 = vpop.f32.mrb[1].mxu1 }
  0xf0   :  { %v3249_v15 = vpop.f32.mrb[2].mxu1 }
  0xf1   :  { %v3251_v18 = vpop.f32.mrb[3].mxu1 }
  0xf4   :  { %v2508_v19 = vpop.f32.mrb[4].mxu1 }
  0xf5   :  { %v487_v20 = vpop.f32.mrb[5].mxu1 }
  0xf8   :  { %v2515_v21 = vpop.f32.mrb[6].mxu1 }
  0xf9   :  { %v582_v22 = vpop.f32.mrb[7].mxu1 }
  0xfc   :  { %v3253_v23 = vpop.f32.mrb[8].mxu1 }
  0xfd   :  { %v677_v24 = vpop.f32.mrb[9].mxu1 }
 0x100   :  { %v3255_v25 = vpop.f32.mrb[10].mxu1 }
 0x101   :  { %v772_v26 = vpop.f32.mrb[11].mxu1 }
 0x104   :  { %v3257_v27 = vpop.f32.mrb[12].mxu1 }
 0x105   :  { %v867_v28 = vpop.f32.mrb[13].mxu1 }
 0x108   :  { %v2543_v29 = vpop.f32.mrb[14].mxu1 }
 0x109   :  { %v962_v30 = vpop.f32.mrb[15].mxu1 }
 0x10c   :  { %v3259_v31 = vpop.f32.mrb[16].mxu1 }
 0x10d   :  { %v3261_v32 = vpop.f32.mrb[17].mxu1 }
 0x19b   :  { %v231_v42 = vpop.f32.mrb[0].mxu0 }
 0x19c   :  { %v242_v43 = vrot.slane %v231_v42, %v241_v35  ;;  %v420_v44 = vrot.slane %v231_v42, %v419_v36  ;;  %v515_v45 = vrot.slane %v231_v42, %v3607_v37  ;;  %v610_v46 = vrot.slane %v231_v42, %v609_v38  ;;  %v2487_v48 = vpop.f32.mrb[1].mxu0 }
 0x19d   :  { %v705_v49 = vrot.slane %v231_v42, %v704_v39  ;;  %v800_v50 = vrot.slane %v231_v42, %v799_v40  ;;  %v895_v51 = vrot.slane %v231_v42, %v894_v41  ;;  %v2225_v41 = vld [vmem:[%s3600_s7 + $0x1] ss:$0 sm:$0xff] }
 0x19e   :  { %v314_v53 = vadd.f32 %v313_v14, %v242_v43  ;;  %v319_v55 = vadd.f32 %v2494_v12, %v242_v43  ;;  %v488_v56 = vadd.f32 %v487_v20, %v420_v44  ;;  %v493_v57 = vadd.f32 %v2508_v19, %v420_v44 }
 0x19f   :  { %v588_v58 = vadd.f32 %v2515_v21, %v515_v45  ;;  %v583_v61 = vadd.f32 %v582_v22, %v515_v45  ;;  %v678_v63 = vadd.f32 %v677_v24, %v610_v46  ;;  %v773_v0 = vadd.f32 %v772_v26, %v705_v49  ;;  %v2230_v24 = vld [vmem:[%s3600_s7 + $0x2] ss:$0 sm:$0xff]  ;;  %v2240_v45 = vld [vmem:[%s3600_s7 + $0x4] ss:$0 sm:$0xff] }
 0x1a0   :  { %v322_v4 = vmul.f32 0.2, %v314_v53  ;;  %v323_v5 = vmul.f32 0.2, %v319_v55  ;;  %v497_v8 = vmul.f32 0.2, %v493_v57  ;;  %v868_v9 = vadd.f32 %v867_v28, %v800_v50 }
 0x1a1   :  { %v496_v11 = vmul.f32 0.2, %v488_v56  ;;  %v591_v33 = vmul.f32 0.2, %v583_v61  ;;  %v686_v39 = vmul.f32 0.2, %v678_v63  ;;  %v963_v40 = vadd.f32 %v962_v30, %v895_v51 }
 0x1a2   :  { %v325_v14 = vmax.f32 %v319_v55, %v323_v5  ;;  %v324_v12 = vmax.f32 %v314_v53, %v322_v4  ;;  %v781_v20 = vmul.f32 0.2, %v773_v0  ;;  %v876_v19 = vmul.f32 0.2, %v868_v9  ;;  %v2235_v28 = vld [vmem:[%s3600_s7 + $0x3] ss:$0 sm:$0xff] }
 0x1a3   :  { %v498_v21 = vmax.f32 %v488_v56, %v496_v11  ;;  %v593_v22 = vmax.f32 %v583_v61, %v591_v33  ;;  %v688_v26 = vmax.f32 %v678_v63, %v686_v39  ;;  %v968_v30 = vadd.f32 %v2543_v29, %v895_v51 }
 0x1a4   :  { %v331_v43 = vmul.f32 %v2218_v60, %v324_v12  ;;  %v783_v44 = vmax.f32 %v773_v0, %v781_v20  ;;  %v878_v48 = vmax.f32 %v868_v9, %v876_v19  ;;  %v971_v53 = vmul.f32 0.2, %v963_v40 }
 0x1a5   :  { %v990_v55 = vrot.slane %v231_v42, %v989_v52  ;;  %v505_v61 = vmul.f32 %v2225_v41, %v498_v21  ;;  %v600_v4 = vmul.f32 %v2230_v24, %v593_v22  ;;  %v695_v5 = vmul.f32 %v2235_v28, %v688_v26 }
 0x1a6   :  { %v406_v56 = vadd.f32 %v3251_v18, %v331_v43  ;;  %v972_v63 = vmul.f32 0.2, %v968_v30  ;;  %v332_v11 = vmul.f32 %v2218_v60, %v325_v14  ;;  %v499_v33 = vmax.f32 %v493_v57, %v497_v8  ;;  %v2245_v57 = vld [vmem:[%s3600_s7 + $0x5] ss:$0 sm:$0xff] }
 0x1a7   :  { %v592_v39 = vmul.f32 0.2, %v588_v58  ;;  %v790_v29 = vmul.f32 %v2240_v45, %v783_v44  ;;  %v683_v51 = vadd.f32 %v3253_v23, %v610_v46  ;;  %v778_v0 = vadd.f32 %v3255_v25, %v705_v49 }
 0x1a8   :  { %v507_v37 = vadd.f32 %v505_v61, %v406_v56  ;;  %v973_v12 = vmax.f32 %v963_v40, %v971_v53  ;;  %v411_v9 = vadd.f32 %v3249_v15, %v332_v11  ;;  %v506_v20 = vmul.f32 %v2225_v41, %v499_v33 }
 0x1a9   :  { %v594_v42 = vmax.f32 %v588_v58, %v592_v39  ;;  %v687_v18 = vmul.f32 0.2, %v683_v51  ;;  %v782_v19 = vmul.f32 0.2, %v778_v0  ;;  %v873_v21 = vadd.f32 %v3257_v27, %v800_v50 }
 0x1aa   :  { %v602_v52 = vadd.f32 %v600_v4, %v507_v37  ;;  %v508_v60 = vadd.f32 %v506_v20, %v411_v9  ;;  %v1063_v23 = vadd.f32 %v3259_v31, %v990_v55  ;;  %v1058_v25 = vadd.f32 %v3261_v32, %v990_v55  ;;  %v2250_v37 = vld [vmem:[%s3600_s7 + $0x6] ss:$0 sm:$0xff]  ;;  %v2255_v31 = vld [vmem:[%s3600_s7 + $0x7] ss:$0 sm:$0xff] }
 0x1ab   :  { %v601_v8 = vmul.f32 %v2230_v24, %v594_v42  ;;  %v689_v49 = vmax.f32 %v683_v51, %v687_v18  ;;  %v784_v15 = vmax.f32 %v778_v0, %v782_v19  ;;  %v877_v40 = vmul.f32 0.2, %v873_v21 }
 0x1ac   :  { %v697_v46 = vadd.f32 %v695_v5, %v602_v52  ;;  %v1067_v27 = vmul.f32 0.2, %v1063_v23  ;;  %v1066_v50 = vmul.f32 0.2, %v1058_v25  ;;  %v885_v41 = vmul.f32 %v2245_v57, %v878_v48 }
 0x1ad   :  { %v603_v58 = vadd.f32 %v601_v8, %v508_v60  ;;  %v696_v22 = vmul.f32 %v2235_v28, %v689_v49  ;;  %v879_v26 = vmax.f32 %v873_v21, %v877_v40  ;;  %v974_v24 = vmax.f32 %v968_v30, %v972_v63 }
 0x1ae   :  { %v792_v14 = vadd.f32 %v790_v29, %v697_v46  ;;  %v1068_v32 = vmax.f32 %v1058_v25, %v1066_v50  ;;  %v980_v44 = vmul.f32 %v2250_v37, %v973_v12  ;;  %v791_v55 = vmul.f32 %v2240_v45, %v784_v15  ;;  %v63_v25 = vld [vmem:[%s3596_s3] sm:$0xff] }
 0x1af   :  { %v698_v53 = vadd.f32 %v696_v22, %v603_v58  ;;  %v1069_v56 = vmax.f32 %v1063_v23, %v1067_v27  ;;  %v886_v5 = vmul.f32 %v2245_v57, %v879_v26  ;;  %v981_v33 = vmul.f32 %v2250_v37, %v974_v24  ;;  %2551 = vmatprep.subr.mxu1 %v63_v25 }
 0x1b0   :  { %v887_v43 = vadd.f32 %v885_v41, %v792_v14  ;;  %v1075_v11 = vmul.f32 %v2255_v31, %v1068_v32  ;;  %2552 = vmatpush3.msra.mxu1 %v63_v25 }
 0x1b1   :  { %v793_v4 = vadd.f32 %v791_v55, %v698_v53  ;;  %v1076_v30 = vmul.f32 %v2255_v31, %v1069_v56  ;;  %2556 = vmatprep.subr.mxu1 %v63_v25 }
 0x1b2   :  { %v982_v61 = vadd.f32 %v980_v44, %v887_v43 }
 0x1b3   :  { %v888_v39 = vadd.f32 %v886_v5, %v793_v4 }
 0x1b4   :  { %v3312_v48 = vadd.f32 %v1075_v11, %v982_v61 }
 0x1b5   :  { %v983_v28 = vadd.f32 %v981_v33, %v888_v39 }
 0x1b6   :  { %v1079_v63 = vsel %vm80_vm0, %v3312_v48, -inf  ;;  %v1088_v51 = vsel %vm91_vm2, %v3312_v48, -inf  ;;  %v1097_v0 = vsel %vm100_vm3, %v3312_v48, -inf  ;;  %v1106_v9 = vsel %vm109_vm4, %v3312_v48, -inf }
 0x1b7   :  { %1080 = vmax.xlane.f32.xlu0 %v1079_v63  ;;  %v3316_v29 = vadd.f32 %v1076_v30, %v983_v28  ;;  %v1115_v42 = vsel %vm118_vm5, %v3312_v48, -inf  ;;  %v1124_v18 = vsel %vm127_vm6, %v3312_v48, -inf  ;;  %v1133_v21 = vsel %vm136_vm7, %v3312_v48, -inf  ;;  %v1483_v63 = vld [vmem:[%s3599_s6 + $0x38] sm:$0xff] }
 0x1b8   :  { %v1142_v60 = vsel %vm145_vm8, %v3312_v48, -inf }
 0x1b9   :  { %v1082_v45 = vsel %vm80_vm0, %v3316_v29, -inf  ;;  %v1091_v12 = vsel %vm91_vm2, %v3316_v29, -inf  ;;  %v1100_v20 = vsel %vm100_vm3, %v3316_v29, -inf  ;;  %v1109_v52 = vsel %vm109_vm4, %v3316_v29, -inf }
 0x1ba   :  { %1083 = vmax.xlane.f32.xlu1 %v1082_v45  ;;  %v1118_v19 = vsel %vm118_vm5, %v3316_v29, -inf  ;;  %v1127_v57 = vsel %vm127_vm6, %v3316_v29, -inf  ;;  %v1136_v8 = vsel %vm136_vm7, %v3316_v29, -inf  ;;  %v1145_v23 = vsel %vm145_vm8, %v3316_v29, -inf  ;;  %v1484_v45 = vld [vmem:[%s3599_s6 + $0x40] sm:$0xff] }
 0x1bb   :  { %1089 = vmax.xlane.f32.xlu0 %v1088_v51  ;;  %vm1148_vm2 = vcmask 64568   ;;  %vm1153_vm3 = vcmask 64512   ;;  %v1485_v51 = vld [vmem:[%s3599_s6 + $0x48] sm:$0xff]  ;;  %vm2171_vm7 = vcmask 31744  }
 0x1be   :  { %1098 = vmax.xlane.f32.xlu1 %v1097_v0  ;;  %v2832_v0 = vpack.c.bf16 %v1485_v51, %v1484_v45  ;;  %v2295_v45 = vld [vmem:[%s3603_s10 + $0xe8] sm:$0xff] }
 0x1bf   :  { %1092 = vmax.xlane.f32.xlu0 %v1091_v12  ;;  %v1486_v12 = vld [vmem:[%s3599_s6 + $0x50] sm:$0xff] }
 0x1c2   :  { %1107 = vmax.xlane.f32.xlu1 %v1106_v9  ;;  %v1487_v9 = vld [vmem:[%s3599_s6 + $0x58] sm:$0xff] }
 0x1c3   :  { %1101 = vmax.xlane.f32.xlu0 %v1100_v20  ;;  %v2836_v20 = vpack.c.bf16 %v1487_v9, %v1486_v12  ;;  %v2296_v12 = vld [vmem:[%s3603_s10 + $0xf0] sm:$0xff]  ;;  %v2297_v9 = vld [vmem:[%s3603_s10 + $0xf8] sm:$0xff] }
 0x1c6   :  { %1116 = vmax.xlane.f32.xlu1 %v1115_v42  ;;  %v1488_v42 = vld [vmem:[%s3599_s6 + $0x60] sm:$0xff] }
 0x1c7   :  { %1110 = vmax.xlane.f32.xlu0 %v1109_v52  ;;  %v1489_v52 = vld [vmem:[%s3599_s6 + $0x68] sm:$0xff] }
 0x1ca   :  { %1125 = vmax.xlane.f32.xlu1 %v1124_v18  ;;  %v2840_v18 = vpack.c.bf16 %v1489_v52, %v1488_v42  ;;  %v1670_v42 = vld [vmem:[%s3603_s10 + $0x18] sm:$0xff]  ;;  %v1586_v52 = vld [vmem:[%s3602_s9] sm:$0xf] }
 0x1cb   :  { %1119 = vmax.xlane.f32.xlu0 %v1118_v19  ;;  %v1490_v19 = vld [vmem:[%s3599_s6 + $0x70] sm:$0xff] }
 0x1ce   :  { %1134 = vmax.xlane.f32.xlu1 %v1133_v21  ;;  %v1491_v21 = vld [vmem:[%s3599_s6 + $0x78] sm:$0xff] }
 0x1cf   :  { %1128 = vmax.xlane.f32.xlu0 %v1127_v57  ;;  %v2844_v57 = vpack.c.bf16 %v1491_v21, %v1490_v19  ;;  %v1671_v21 = vld [vmem:[%s3603_s10 + $0x20] sm:$0xff] }
 0x1d2   :  { %1143 = vmax.xlane.f32.xlu1 %v1142_v60 }
 0x1d3   :  { %1137 = vmax.xlane.f32.xlu0 %v1136_v8 }
 0x1d7   :  { %1146 = vmax.xlane.f32.xlu0 %v1145_v23 }
 0x244   :  { %v1081_v46 = vpop.xlane.xlu0 %1080 }
 0x245   :  { %1086 = vst.msk [vmem:[#allocation3] sm:$0xff] %vm1085_vm9, %v1081_v46 }
 0x247   :  { %v1084_v49 = vpop.xlane.xlu1 %1083 }
 0x248   :  { %v1090_v15 = vpop.xlane.xlu0 %1089  ;;  %1087 = vst.msk [vmem:[#allocation3 + $0x8] sm:$0xff] %vm1085_vm9, %v1084_v49 }
 0x249   :  { %1095 = vst.msk [vmem:[#allocation3] sm:$0xff] %vm1094_vm10, %v1090_v15 }
 0x24b   :  { %v1099_v40 = vpop.xlane.xlu1 %1098 }
 0x24c   :  { %v1093_v37 = vpop.xlane.xlu0 %1092  ;;  %1104 = vst.msk [vmem:[#allocation3] sm:$0xff] %vm1103_vm11, %v1099_v40 }
 0x24d   :  { %1096 = vst.msk [vmem:[#allocation3 + $0x8] sm:$0xff] %vm1094_vm10, %v1093_v37  ;;  %v2268_v37 = vld [vmem:[%s3603_s10 + $0x40] sm:$0xff] }
 0x24f   :  { %v1108_v58 = vpop.xlane.xlu1 %1107 }
 0x250   :  { %v1102_v27 = vpop.xlane.xlu0 %1101  ;;  %1113 = vst.msk [vmem:[#allocation3] sm:$0xff] %vm1112_vm12, %v1108_v58  ;;  %v2269_v58 = vld [vmem:[%s3603_s10 + $0x48] sm:$0xff] }
 0x251   :  { %1105 = vst.msk [vmem:[#allocation3 + $0x8] sm:$0xff] %vm1103_vm11, %v1102_v27  ;;  %v2868_v27 = vpack.c.bf16 %v2269_v58, %v2268_v37  ;;  %v2282_v37 = vld [vmem:[%s3603_s10 + $0x98] sm:$0xff] }
 0x253   :  { %v1117_v50 = vpop.xlane.xlu1 %1116 }
 0x254   :  { %v1111_v14 = vpop.xlane.xlu0 %1110  ;;  %1122 = vst.msk [vmem:[#allocation3] sm:$0xff] %vm1121_vm13, %v1117_v50  ;;  %v2270_v50 = vld [vmem:[%s3603_s10 + $0x50] sm:$0xff] }
 0x255   :  { %1114 = vst.msk [vmem:[#allocation3 + $0x8] sm:$0xff] %vm1112_vm12, %v1111_v14 }
 0x257   :  { %v1126_v41 = vpop.xlane.xlu1 %1125 }
 0x258   :  { %v1120_v22 = vpop.xlane.xlu0 %1119  ;;  %1131 = vst.msk [vmem:[#allocation3] sm:$0xff] %vm1130_vm14, %v1126_v41  ;;  %v2272_v41 = vld [vmem:[%s3603_s10 + $0x60] sm:$0xff] }
 0x259   :  { %1123 = vst.msk [vmem:[#allocation3 + $0x8] sm:$0xff] %vm1121_vm13, %v1120_v22  ;;  %v2273_v22 = vld [vmem:[%s3603_s10 + $0x68] sm:$0xff] }
 0x25b   :  { %v1135_v26 = vpop.xlane.xlu1 %1134 }
 0x25c   :  { %v1129_v24 = vpop.xlane.xlu0 %1128  ;;  %1140 = vst.msk [vmem:[#allocation3] sm:$0xff] %vm1139_vm15, %v1135_v26  ;;  %v2274_v26 = vld [vmem:[%s3603_s10 + $0x70] sm:$0xff] }
 0x25d   :  { %1132 = vst.msk [vmem:[#allocation3 + $0x8] sm:$0xff] %vm1130_vm14, %v1129_v24  ;;  %v2876_v24 = vpack.c.bf16 %v2273_v22, %v2272_v41  ;;  %v2286_v41 = vld [vmem:[%s3603_s10 + $0xb8] sm:$0xff] }
 0x25f   :  { %v1144_v31 = vpop.xlane.xlu1 %1143 }
 0x260   :  { %v1138_v32 = vpop.xlane.xlu0 %1137  ;;  %1149 = vst.msk [vmem:[#allocation3] sm:$0xff] %vm1148_vm2, %v1144_v31  ;;  %v2275_v31 = vld [vmem:[%s3603_s10 + $0x78] sm:$0xff] }
 0x261   :  { %1141 = vst.msk [vmem:[#allocation3 + $0x8] sm:$0xff] %vm1139_vm15, %v1138_v32  ;;  %v2880_v32 = vpack.c.bf16 %v2275_v31, %v2274_v26 }
 0x264   :  { %v1147_v43 = vpop.xlane.xlu0 %1146 }
 0x265   :  { %1150 = vst.msk [vmem:[#allocation3 + $0x8] sm:$0xff] %vm1148_vm2, %v1147_v43  ;;  %v2290_v43 = vld [vmem:[%s3603_s10 + $0xc0] sm:$0xff] }
 0x267   :  { %v1151_v44 = vld [vmem:[#allocation3] sm:$0xff] }
 0x268   :  { %2553 = vmatprep.mubr.msk.f32.mxu1 %vm1153_vm3, %v1151_v44  ;;  %v2291_v44 = vld [vmem:[%s3603_s10 + $0xc8] sm:$0xff] }
 0x26c   :  { %v1152_v53 = vld [vmem:[#allocation3 + $0x8] sm:$0xff] }
 0x26d   :  { %2554 = vmatmul.mubr.msk.f32.vlgmr.msra.gmra.mrb[18].mxu1 %vm1153_vm3, %v1152_v53  ;;  %v2900_v53 = vpack.c.bf16 %v2291_v44, %v2290_v43 }
 0x26e   :  { %2557 = vmatpush3.xpose.msra.mxu1 %v63_v25 }
 0x26f   :  { %2561 = vmatprep.subr.mxu1 %v63_v25 }
 0x340   :  { %v2555_v55 = vpop.f32.mrb[18].mxu1 }
 0x341   :  { %v1236_v56 = vsub.f32 %v3316_v29, %v2555_v55  ;;  %v1226_v61 = vpop.f32.mrb[19].mxu1  ;;  %v2260_v55 = vld [vmem:[%s3601_s8] ss:$0 sm:$0xff] }
 0x342   :  { %v1235_v4 = vsub.f32 %v3312_v48, %v1226_v61  ;;  %v1482_v48 = vld [vmem:[%s3599_s6 + $0x30] sm:$0xff] }
 0x343   :  { %v1239_v5 = vmul.f32 1.442695, %v1236_v56  ;;  %v2828_v29 = vpack.c.bf16 %v1483_v63, %v1482_v48 }
 0x344   :  { %v1237_v11 = vmul.f32 1.442695, %v1235_v4 }
 0x346   :  { %2928 = vpow2.f32 %v1237_v11 }
 0x347   :  { %2930 = vpow2.f32 %v1239_v5 }
 0x350   :  { %v3355_v33 = vpop.eup %2928 }
 0x351   :  { %v3357_v39 = vpop.eup %2930  ;;  %2558 = vmatprep.mubr.f32.mxu1 %v3355_v33 }
 0x352   :  { %2559 = vmatmul.mubr.f32.vlgmr.msra.gmra.mrb[20].mxu1 %v3357_v39 }
 0x353   :  { %2562 = vmatpush3.msra.mxu1 %v63_v25 }
 0x354   :  { %2785 = vmatprep.subr.bf16.mxu1 %v3094_v6 }
 0x425   :  { %v2560_v28 = vpop.f32.mrb[20].mxu1 }
 0x426   :  { %v1307_v30 = vpop.f32.mrb[21].mxu1 }
 0x427   :  { %2563 = vmatprep.mubr.msk.f32.mxu1 %vm1153_vm3, %v1307_v30 }
 0x428   :  { %2564 = vmatmul.mubr.msk.f32.vlgmr.msra.gmra.mrb[22].mxu1 %vm1153_vm3, %v2560_v28 }
 0x429   :  { %2787 = vmatpush3.bf16.msra.mxu1 %v3094_v6  ;;  %v1476_v6 = vld [vmem:[%s3599_s6] sm:$0xff] }
 0x42a   :  { %2789 = vmatprep.subr.bf16.mxu1 %v3211_v47 }
 0x42d   :  { %2791 = vmatpush3.bf16.msra.mxu1 %v3211_v47  ;;  %v1477_v47 = vld [vmem:[%s3599_s6 + $0x8] sm:$0xff] }
 0x42e   :  { %2793 = vmatprep.subr.bf16.mxu1 %v3219_v54 }
 0x431   :  { %2795 = vmatpush3.bf16.msra.mxu1 %v3219_v54  ;;  %v1478_v54 = vld [vmem:[%s3599_s6 + $0x10] sm:$0xff] }
 0x432   :  { %2797 = vmatprep.subr.bf16.mxu1 %v3227_v59 }
 0x435   :  { %2799 = vmatpush3.bf16.msra.mxu1 %v3227_v59  ;;  %v2816_v59 = vpack.c.bf16 %v1477_v47, %v1476_v6 }
 0x436   :  { %2801 = vmatprep.subr.bf16.mxu1 %v3231_v62 }
 0x437   :  { %2817 = vmatprep.subr.bf16.mxu0 %v2816_v59 }
 0x438   :  { %2819 = vmatpush3.bf16.msra.mxu0 %v2816_v59  ;;  %v2293_v59 = vld [vmem:[%s3603_s10 + $0xd8] sm:$0xff] }
 0x439   :  { %2803 = vmatpush3.bf16.msra.mxu1 %v3231_v62  ;;  %v1479_v62 = vld [vmem:[%s3599_s6 + $0x18] sm:$0xff] }
 0x43a   :  { %2805 = vmatprep.subr.bf16.mxu1 %v3235_v1 }
 0x43d   :  { %2807 = vmatpush3.bf16.msra.mxu1 %v3235_v1  ;;  %v2820_v1 = vpack.c.bf16 %v1479_v62, %v1478_v54  ;;  %v2292_v54 = vld [vmem:[%s3603_s10 + $0xd0] sm:$0xff] }
 0x43e   :  { %2809 = vmatprep.subr.bf16.mxu1 %v3239_v7  ;;  %v2904_v48 = vpack.c.bf16 %v2293_v59, %v2292_v54 }
 0x43f   :  { %2821 = vmatprep.subr.bf16.mxu0 %v2820_v1 }
 0x440   :  { %2823 = vmatpush3.bf16.msra.mxu0 %v2820_v1  ;;  %v1667_v1 = vld [vmem:[%s3603_s10] sm:$0xff] }
 0x441   :  { %2811 = vmatpush3.bf16.msra.mxu1 %v3239_v7  ;;  %v1481_v7 = vld [vmem:[%s3599_s6 + $0x28] sm:$0xff] }
 0x442   :  { %2813 = vmatprep.subr.bf16.mxu1 %v3243_v10 }
 0x445   :  { %2815 = vmatpush3.bf16.msra.mxu1 %v3243_v10 }
 0x446   :  { %2848 = vmatprep.subr.bf16.mxu1 %v2974_v3  ;;  %v1480_v3 = vld [vmem:[%s3599_s6 + $0x20] sm:$0xff] }
 0x447   :  { %v2824_v10 = vpack.c.bf16 %v1481_v7, %v1480_v3  ;;  %v1668_v3 = vld [vmem:[%s3603_s10 + $0x8] sm:$0xff] }
 0x448   :  { %v2852_v51 = vpack.c.bf16 %v1668_v3, %v1667_v1  ;;  %v1857_v3 = vstv %s2278_s30 }
 0x449   :  { %2825 = vmatprep.subr.bf16.mxu0 %v2824_v10 }
 0x44a   :  { %2827 = vmatpush3.bf16.msra.mxu0 %v2824_v10 }
 0x44b   :  { %2829 = vmatprep.subr.bf16.mxu0 %v2828_v29 }
 0x44e   :  { %2831 = vmatpush3.bf16.msra.mxu0 %v2828_v29  ;;  %v2294_v29 = vld [vmem:[%s3603_s10 + $0xe0] sm:$0xff] }
 0x44f   :  { %2833 = vmatprep.subr.bf16.mxu0 %v2832_v0 }
 0x452   :  { %2835 = vmatpush3.bf16.msra.mxu0 %v2832_v0  ;;  %v2908_v0 = vpack.c.bf16 %v2295_v45, %v2294_v29 }
 0x453   :  { %2837 = vmatprep.subr.bf16.mxu0 %v2836_v20 }
 0x456   :  { %2839 = vmatpush3.bf16.msra.mxu0 %v2836_v20  ;;  %v1669_v20 = vld [vmem:[%s3603_s10 + $0x10] sm:$0xff] }
 0x457   :  { %2841 = vmatprep.subr.bf16.mxu0 %v2840_v18  ;;  %v2856_v19 = vpack.c.bf16 %v1670_v42, %v1669_v20 }
 0x45a   :  { %2843 = vmatpush3.bf16.msra.mxu0 %v2840_v18  ;;  %v2912_v18 = vpack.c.bf16 %v2297_v9, %v2296_v12  ;;  %v3608_v12 = vsub.s32 2, %v3263_v34 }
 0x45b   :  { %2845 = vmatprep.subr.bf16.mxu0 %v2844_v57 }
 0x45e   :  { %2847 = vmatpush3.bf16.msra.mxu0 %v2844_v57  ;;  %v1672_v57 = vld [vmem:[%s3603_s10 + $0x28] sm:$0xff] }
 0x45f   :  { %2869 = vmatprep.subr.bf16.mxu0 %v2868_v27 }
 0x4fb   :  { %v2565_v60 = vpop.f32.mrb[22].mxu1 }
 0x4fc   :  { %2932 = vrcp.f32 %v2565_v60  ;;  %v1388_v8 = vpop.f32.mrb[23].mxu1  ;;  %v2860_v60 = vpack.c.bf16 %v1672_v57, %v1671_v21 }
 0x4fd   :  { %2934 = vrcp.f32 %v1388_v8  ;;  %v1673_v8 = vld [vmem:[%s3603_s10 + $0x30] sm:$0xff] }
 0x506   :  { %v2933_v23 = vpop.eup %2932 }
 0x507   :  { %v2935_v25 = vpop.eup %2934  ;;  %v1400_v49 = vmul.f32 %v2933_v23, %v3357_v39  ;;  %v1674_v23 = vld [vmem:[%s3603_s10 + $0x38] sm:$0xff] }
 0x508   :  { %v1399_v46 = vmul.f32 %v2935_v25, %v3355_v33  ;;  %v2864_v25 = vpack.c.bf16 %v1674_v23, %v1673_v8 }
 0x50a   :  { %2598 = vmatprep.mubr.f32.mxu1 %v1399_v46  ;;  %v2279_v46 = vld [vmem:[%s3603_s10 + $0x80] sm:$0xff] }
 0x50b   :  { %2599 = vmatmul.mubr.f32.vlgmr.msra.gmra.mrb[24].mxu1 %v1400_v49  ;;  %v2280_v49 = vld [vmem:[%s3603_s10 + $0x88] sm:$0xff] }
 0x50c   :  { %2640 = vmatprep.mubr.msk.f32.mxu1 %vm2980_vm1, %v2973_v2  ;;  %v2271_v2 = vld [vmem:[%s3603_s10 + $0x58] sm:$0xff]  ;;  %vm1587_vm1 = vcmask 523264  }
 0x50d   :  { %v2872_v14 = vpack.c.bf16 %v2271_v2, %v2270_v50  ;;  %vm2850_vm6 = vmpackc.low %vm1587_vm1, %vm1587_vm1  ;;  %v2284_v50 = vld [vmem:[%s3603_s10 + $0xa8] sm:$0xff] }
 0x5de   :  { %v2600_v15 = vpop.f32.mrb[24].mxu1 }
 0x5df   :  { %v1467_v40 = vpop.f32.mrb[25].mxu1 }
 0x5e0   :  { %2633 = vmatprep.mubr.f32.mxu0 %v1467_v40  ;;  %v2281_v40 = vld [vmem:[%s3603_s10 + $0x90] sm:$0xff] }
 0x5e1   :  { %2634 = vmatmul.mubr.f32.vlgmr.msra.gmra.mrb[2].mxu0 %v2600_v15  ;;  %v2884_v15 = vpack.c.bf16 %v2280_v49, %v2279_v46  ;;  %v2888_v58 = vpack.c.bf16 %v2282_v37, %v2281_v40 }
 0x5e2   :  { %2871 = vmatpush3.bf16.msra.mxu0 %v2868_v27  ;;  %v2283_v27 = vld [vmem:[%s3603_s10 + $0xa0] sm:$0xff] }
 0x5e3   :  { %2873 = vmatprep.subr.bf16.mxu0 %v2872_v14  ;;  %v2892_v2 = vpack.c.bf16 %v2284_v50, %v2283_v27 }
 0x5e6   :  { %2875 = vmatpush3.bf16.msra.mxu0 %v2872_v14  ;;  %v2285_v14 = vld [vmem:[%s3603_s10 + $0xb0] sm:$0xff]  ;;  %s1758_s10 = sld [smem:[#allocation4]] }
 0x5e7   :  { %2877 = vmatprep.subr.bf16.mxu0 %v2876_v24  ;;  %v2896_v22 = vpack.c.bf16 %v2286_v41, %v2285_v14 }
 0x5ea   :  { %2879 = vmatpush3.bf16.msra.mxu0 %v2876_v24 }
 0x5eb   :  { %2881 = vmatprep.subr.bf16.mxu0 %v2880_v32 }
 0x5ec   :  { %v1759_v54 = vstv %s1758_s10 }
 0x5ee   :  { %2883 = vmatpush3.bf16.msra.mxu0 %v2880_v32 }
 0x5ef   :  { %2901 = vmatprep.subr.bf16.mxu0 %v2900_v53 }
 0x6b4   :  { %v2635_v56 = vpop.f32.mrb[2].mxu0 }
 0x6b5   :  { %v1571_v61 = vadd.f32 %v2635_v56, %v2260_v55  ;;  %v1565_v4 = vpop.f32.mrb[3].mxu0 }
 0x6b6   :  { %v1566_v5 = vadd.f32 %v2260_v55, %v1565_v4 }
 0x6b7   :  { %v1577_v11 = vmin.f32 %v1571_v61, 0.0  ;;  %vm1575_vm4 = vcmp.gt.f32.partialorder %v1571_v61, 0.0 }
 0x6b8   :  { %v1576_v33 = vmin.f32 %v1566_v5, 0.0  ;;  %vm1574_vm5 = vcmp.gt.f32.partialorder %v1566_v5, 0.0 }
 0x6b9   :  { %v1580_v39 = vmul.f32 1.442695, %v1577_v11 }
 0x6ba   :  { %v1578_v28 = vmul.f32 1.442695, %v1576_v33 }
 0x6bb   :  { %2936 = vpow2.f32 %v1580_v39 }
 0x6bc   :  { %2938 = vpow2.f32 %v1578_v28 }
 0x6c5   :  { %v2937_v30 = vpop.eup %2936 }
 0x6c6   :  { %v2939_v6 = vpop.eup %2938  ;;  %v2262_v47 = vadd.f32 -1.0, %v2937_v30 }
 0x6c7   :  { %v2261_v62 = vadd.f32 -1.0, %v2939_v6 }
 0x6c8   :  { %v3477_v7 = vsel %vm1575_vm4, %v1571_v61, %v2262_v47 }
 0x6c9   :  { %v1584_v10 = vsel %vm1574_vm5, %v1566_v5, %v2261_v62 }
 0x6ca   :  { %v2849_v63 = vpack.c.bf16 %v3477_v7, %v1584_v10  ;;  %2678 = vmatprep.mubr.msk.f32.mxu0 %vm1587_vm1, %v1584_v10 }
 0x6cb   :  { %2679 = vmatmul.mubr.msk.f32.vlgmr.msra.gmra.mrb[4].mxu0 %vm1587_vm1, %v3477_v7 }
 0x6cc   :  { %2903 = vmatpush3.bf16.msra.mxu0 %v2900_v53  ;;  %2851 = vmatpush3.bf16.xpose.msk.msra.mxu1 %vm2850_vm6, %v2849_v63 }
 0x6cd   :  { %2716 = vmatprep.mubr.msk.f32.mxu0 %vm1587_vm1, %v1584_v10  ;;  %2905 = vmatprep.subr.bf16.mxu0 %v2904_v48 }
 0x6ce   :  { %2853 = vmatprep.subr.bf16.mxu1 %v2852_v51 }
 0x6d0   :  { %2907 = vmatpush3.bf16.msra.mxu0 %v2904_v48 }
 0x6d1   :  { %2909 = vmatprep.subr.bf16.mxu0 %v2908_v0 }
 0x6d3   :  { %2641 = vmatmul.mubr.msk.f32.vlgmr.msra.gmra.mrb[26].mxu1 %vm1587_vm1, %v1586_v52 }
 0x6d4   :  { %2911 = vmatpush3.bf16.msra.mxu0 %v2908_v0  ;;  %2855 = vmatpush3.bf16.msra.mxu1 %v2852_v51 }
 0x6d5   :  { %2659 = vmatprep.mubr.msk.f32.mxu1 %vm1587_vm1, %v1584_v10  ;;  %2913 = vmatprep.subr.bf16.mxu0 %v2912_v18 }
 0x6d6   :  { %2857 = vmatprep.subr.bf16.mxu1 %v2856_v19 }
 0x6d8   :  { %2915 = vmatpush3.bf16.msra.mxu0 %v2912_v18  ;;  %2859 = vmatpush3.bf16.msra.mxu1 %v2856_v19 }
 0x6d9   :  { %2861 = vmatprep.subr.bf16.mxu1 %v2860_v60 }
 0x6db   :  { %2717 = vmatmul.mubr.msk.f32.vlgmr.msra.gmra.mrb[6].mxu0 %vm1587_vm1, %v3477_v7 }
 0x6dc   :  { %2863 = vmatpush3.bf16.msra.mxu1 %v2860_v60 }
 0x6dd   :  { %2865 = vmatprep.subr.bf16.mxu1 %v2864_v25 }
 0x6e0   :  { %2867 = vmatpush3.bf16.msra.mxu1 %v2864_v25  ;;  %v2053_v25 = vstv %s2300_s15 }
 0x6e1   :  { %2885 = vmatprep.subr.bf16.mxu1 %v2884_v15 }
 0x6e3   :  { %2660 = vmatmul.mubr.msk.f32.vlgmr.msra.gmra.mrb[28].mxu1 %vm1587_vm1, %v3477_v7 }
 0x6e4   :  { %2887 = vmatpush3.bf16.msra.mxu1 %v2884_v15  ;;  %2697 = vmatprep.mubr.msk.f32.mxu1 %vm1587_vm1, %v1584_v10 }
 0x6e5   :  { %2889 = vmatprep.subr.bf16.mxu1 %v2888_v58 }
 0x6e8   :  { %2891 = vmatpush3.bf16.msra.mxu1 %v2888_v58 }
 0x6e9   :  { %2893 = vmatprep.subr.bf16.mxu1 %v2892_v2 }
 0x6ec   :  { %2895 = vmatpush3.bf16.msra.mxu1 %v2892_v2 }
 0x6ed   :  { %2897 = vmatprep.subr.bf16.mxu1 %v2896_v22 }
 0x6f0   :  { %2899 = vmatpush3.bf16.msra.mxu1 %v2896_v22 }
 0x6f3   :  { %2698 = vmatmul.mubr.msk.f32.vlgmr.msra.gmra.mrb[30].mxu1 %vm1587_vm1, %v3477_v7 }
 0x79e   :  { %v2680_v26 = vpop.f32.mrb[4].mxu0 }
 0x79f   :  { %v1843_v24 = vpop.f32.mrb[5].mxu0 }
 0x7a6   :  { %v1663_v31 = vpop.f32.mrb[26].mxu1 }
 0x7a7   :  { %v1776_v32 = vrot.slane %v1663_v31, %v419_v36  ;;  %v2642_v43 = vpop.f32.mrb[27].mxu1  ;;  %2719 = vmatprep.subr.msk.mxu1 %vm80_vm0, %v1663_v31  ;;  %v1972_v55 = vrot.slane %v1663_v31, %v609_v38  ;;  %v1678_v11 = vrot.slane %v1663_v31, %v241_v35  ;;  %v1874_v9 = vrot.slane %v1663_v31, %v3608_v12 }
 0x7a8   :  { %2720 = vmatpush3.xpose.msk.msra.mxu1 %vm80_vm0, %v1663_v31 }
 0x7a9   :  { %v1849_v44 = vadd.f32 %v2680_v26, %v1776_v32  ;;  %v1844_v53 = vadd.f32 %v1843_v24, %v1776_v32 }
 0x7ab   :  { %v1853_v28 = vmul.f32 0.2, %v1849_v44  ;;  %v1852_v6 = vmul.f32 0.2, %v1844_v53 }
 0x7ad   :  { %v1855_v38 = vmax.f32 %v1849_v44, %v1853_v28  ;;  %v1854_v7 = vmax.f32 %v1844_v53, %v1852_v6 }
 0x7ae   :  { %v2718_v56 = vpop.f32.mrb[6].mxu0 }
 0x7af   :  { %v2045_v61 = vadd.f32 %v2718_v56, %v1972_v55  ;;  %v2039_v4 = vpop.f32.mrb[7].mxu0  ;;  %v1859_v35 = vmul.f32 %v1857_v3, %v1855_v38  ;;  %v1858_v45 = vmul.f32 %v1857_v3, %v1854_v7 }
 0x7b0   :  { %v2040_v5 = vadd.f32 %v2039_v4, %v1972_v55 }
 0x7b1   :  { %v2049_v42 = vmul.f32 0.2, %v2045_v61 }
 0x7b2   :  { %v2048_v19 = vmul.f32 0.2, %v2040_v5 }
 0x7b3   :  { %v2051_v8 = vmax.f32 %v2045_v61, %v2049_v42 }
 0x7b5   :  { %v2055_v40 = vmul.f32 %v2053_v25, %v2051_v8 }
 0x7b6   :  { %v2661_v36 = vpop.f32.mrb[28].mxu1 }
 0x7b7   :  { %v1751_v33 = vadd.f32 %v2661_v36, %v1678_v11  ;;  %v1745_v39 = vpop.f32.mrb[29].mxu1  ;;  %v2301_v36 = vld [vmem:[%s3605_s12] ss:$0 sm:$0xff]  ;;  %s2981_s12 = smov 4  }
 0x7b8   :  { %v1746_v30 = vadd.f32 %v1745_v39, %v1678_v11 }
 0x7b9   :  { %v1755_v47 = vmul.f32 0.2, %v1751_v33 }
 0x7ba   :  { %v1754_v59 = vmul.f32 0.2, %v1746_v30 }
 0x7bb   :  { %v1757_v62 = vmax.f32 %v1751_v33, %v1755_v47 }
 0x7bc   :  { %v1756_v1 = vmax.f32 %v1746_v30, %v1754_v59 }
 0x7bd   :  { %v1761_v10 = vmul.f32 %v1759_v54, %v1757_v62 }
 0x7be   :  { %v1760_v48 = vmul.f32 %v1759_v54, %v1756_v1 }
 0x7bf   :  { %v1763_v63 = vadd.f32 %v2308_v17, %v1761_v10  ;;  %v1955_v17 = vstv %s2289_s14 }
 0x7c0   :  { %v1762_v29 = vadd.f32 %v2307_v16, %v1760_v48  ;;  %v2050_v16 = vmax.f32 %v2040_v5, %v2048_v19 }
 0x7c1   :  { %v1861_v51 = vadd.f32 %v1859_v35, %v1763_v63 }
 0x7c2   :  { %v1860_v0 = vadd.f32 %v1858_v45, %v1762_v29  ;;  %v2054_v37 = vmul.f32 %v2053_v25, %v2050_v16 }
 0x7c6   :  { %v2699_v20 = vpop.f32.mrb[30].mxu1 }
 0x7c7   :  { %v1947_v52 = vadd.f32 %v2699_v20, %v1874_v9  ;;  %v1941_v18 = vpop.f32.mrb[31].mxu1 }
 0x7c8   :  { %v1942_v21 = vadd.f32 %v1941_v18, %v1874_v9 }
 0x7c9   :  { %v1951_v57 = vmul.f32 0.2, %v1947_v52 }
 0x7ca   :  { %v1950_v60 = vmul.f32 0.2, %v1942_v21 }
 0x7cb   :  { %v1953_v13 = vmax.f32 %v1947_v52, %v1951_v57 }
 0x7cc   :  { %v1952_v23 = vmax.f32 %v1942_v21, %v1950_v60 }
 0x7cd   :  { %v1957_v46 = vmul.f32 %v1955_v17, %v1953_v13 }
 0x7ce   :  { %v1956_v49 = vmul.f32 %v1955_v17, %v1952_v23 }
 0x7cf   :  { %v1959_v15 = vadd.f32 %v1957_v46, %v1861_v51 }
 0x7d0   :  { %v1958_v34 = vadd.f32 %v1956_v49, %v1860_v0 }
 0x7d1   :  { %v2057_v58 = vadd.f32 %v2055_v40, %v1959_v15 }
 0x7d2   :  { %v2056_v27 = vadd.f32 %v2054_v37, %v1958_v34 }
 0x7d3   :  { %v2061_v50 = vsel %vm80_vm0, %v2057_v58, -inf }
 0x7d4   :  { %2062 = vmax.xlane.f32.xlu0 %v2061_v50  ;;  %v2058_v2 = vsel %vm80_vm0, %v2056_v27, -inf }
 0x7d5   :  { %2059 = vmax.xlane.f32.xlu1 %v2058_v2 }
 0x861   :  { %v2063_v14 = vpop.xlane.xlu0 %2062 }
 0x862   :  { %v2065_v41 = vsub.f32 %v2057_v58, %v2063_v14  ;;  %v2060_v22 = vpop.xlane.xlu1 %2059 }
 0x863   :  { %v2064_v26 = vsub.f32 %v2056_v27, %v2060_v22 }
 0x864   :  { %v2068_v24 = vmul.f32 1.442695, %v2065_v41 }
 0x865   :  { %v2066_v31 = vmul.f32 1.442695, %v2064_v26 }
 0x866   :  { %2940 = vpow2.f32 %v2068_v24 }
 0x867   :  { %2942 = vpow2.f32 %v2066_v31 }
 0x870   :  { %v2941_v32 = vpop.eup %2940 }
 0x871   :  { %v2943_v43 = vpop.eup %2942  ;;  %v2073_v44 = vsel %vm80_vm0, %v2941_v32, 0.0 }
 0x872   :  { %2074 = vadd.xlane.f32.xlu0 %v2073_v44  ;;  %v2070_v53 = vsel %vm80_vm0, %v2943_v43, 0.0 }
 0x873   :  { %2071 = vadd.xlane.f32.xlu1 %v2070_v53 }
 0x8ff   :  { %v2075_v55 = vpop.xlane.xlu0 %2074 }
 0x900   :  { %2944 = vrcp.f32 %v2075_v55  ;;  %v2072_v56 = vpop.xlane.xlu1 %2071 }
 0x901   :  { %2946 = vrcp.f32 %v2072_v56 }
 0x90a   :  { %v2945_v61 = vpop.eup %2944 }
 0x90b   :  { %v2947_v4 = vpop.eup %2946  ;;  %v2079_v11 = vmul.f32 %v2945_v61, %v2941_v32 }
 0x90c   :  { %v2078_v5 = vmul.f32 %v2947_v4, %v2943_v43 }
 0x90e   :  { %2721 = vmatprep.mubr.msk.f32.mxu1 %vm80_vm0, %v2078_v5 }
 0x90f   :  { %2722 = vmatmul.mubr.msk.f32.vlgmr.msra.gmra.mrb[32].mxu1 %vm80_vm0, %v2079_v11  ;;  %vm2208_vm0 = vcmask 64544  }
 0x9e2   :  { %v2723_v33 = vpop.f32.mrb[32].mxu1 }
 0x9e3   :  { %v2168_v39 = vadd.f32 %v2723_v33, %v2301_v36  ;;  %v2162_v28 = vpop.f32.mrb[33].mxu1 }
 0x9e4   :  { %v2163_v30 = vadd.f32 %v2301_v36, %v2162_v28 }
 0x9e5   :  { %v2175_v6 = vsel %vm2171_vm7, %v2168_v39, -inf  ;;  %2197 = vst.msk [vmem:[%s3606_s13 + $0x8] sm:$0xff] %vm2171_vm7, %v2168_v39 }
 0x9e6   :  { %2176 = vmax.xlane.f32.xlu0 %v2175_v6  ;;  %2196 = vst.msk [vmem:[%s3606_s13] sm:$0xff] %vm2171_vm7, %v2163_v30  ;;  %v2172_v47 = vsel %vm2171_vm7, %v2163_v30, -inf }
 0x9e7   :  { %2173 = vmax.xlane.f32.xlu1 %v2172_v47 }
 0xa73   :  { %v2177_v54 = vpop.xlane.xlu0 %2176 }
 0xa74   :  { %v2179_v59 = vsub.f32 %v2168_v39, %v2177_v54  ;;  %v2174_v62 = vpop.xlane.xlu1 %2173 }
 0xa75   :  { %v2178_v38 = vsub.f32 %v2163_v30, %v2174_v62 }
 0xa76   :  { %v2182_v1 = vmul.f32 1.442695, %v2179_v59 }
 0xa77   :  { %v2180_v3 = vmul.f32 1.442695, %v2178_v38 }
 0xa78   :  { %2948 = vpow2.f32 %v2182_v1 }
 0xa79   :  { %2950 = vpow2.f32 %v2180_v3 }
 0xa82   :  { %v2949_v7 = vpop.eup %2948 }
 0xa83   :  { %v2951_v10 = vpop.eup %2950  ;;  %v2187_v48 = vsel %vm2171_vm7, %v2949_v7, 0.0 }
 0xa84   :  { %2188 = vadd.xlane.f32.xlu0 %v2187_v48  ;;  %v2184_v63 = vsel %vm2171_vm7, %v2951_v10, 0.0 }
 0xa85   :  { %2185 = vadd.xlane.f32.xlu1 %v2184_v63 }
 0xb11   :  { %v2189_v35 = vpop.xlane.xlu0 %2188 }
 0xb12   :  { %2952 = vlog2.f32 %v2189_v35  ;;  %v2186_v29 = vpop.xlane.xlu1 %2185 }
 0xb13   :  { %2954 = vlog2.f32 %v2186_v29 }
 0xb1c   :  { %v2953_v45 = vpop.eup %2952 }
 0xb1d   :  { %v2955_v51 = vpop.eup %2954  ;;  %v2193_v0 = vmul.f32 0.6931472, %v2953_v45 }
 0xb1e   :  { %v2191_v12 = vmul.f32 0.6931472, %v2955_v51 }
 0xb1f   :  { %v2195_v9 = vadd.f32 %v2193_v0, %v2177_v54 }
 0xb20   :  { %v2194_v20 = vadd.f32 %v2191_v12, %v2174_v62 }
 0xb21   :  { %v2199_v42 = vsub.f32 %v2168_v39, %v2195_v9 }
 0xb22   :  { %v2198_v52 = vsub.f32 %v2163_v30, %v2194_v20 }
 0xb23   :  { %2204 = vrot.lane.b32.xlu0 %v2199_v42, %s2981_s12 }
 0xb24   :  { %2202 = vrot.lane.b32.xlu1 %v2198_v52, %s2981_s12 }
 0xb95   :  { %v2205_v18 = vpop.permute.xlu0 %2204 }
 0xb96   :  { %2210 = vst.msk [vmem:[%s3606_s13 + $0x8] sm:$0xff] %vm2208_vm0, %v2205_v18  ;;  %v2203_v19 = vpop.permute.xlu1 %2202 }
 0xb97   :  { %2209 = vst.msk [vmem:[%s3606_s13] sm:$0xff] %vm2208_vm0, %v2203_v19 }
 0xb98   :  { %2215 = vsyncpa [#allocation5], 1 }

</bundles_post_ra>
